<compile_context>
chip_gen: v5e
topology: v5e:2x2
jax: 0.10.0
libtpu: 0.0.40
codegen_flags: <defaults>
</compile_context>

<pallas_src>
import functools

import jax
import jax.numpy as jnp
from jax.experimental import pallas as pl
from jax.experimental.pallas import tpu as pltpu


def _dilconv_kernel(x_ref, wdw_ref, wpw_ref, scale_ref, shift_ref, o_ref, *,
                    K, stride, dilation, H_out, W_out):
    # x_ref:     (H_pad, W_pad, C_in)  zero-padded NHWC input tile (one batch)
    # wdw_ref:   (K*K, C_in)           depthwise weights, channels on lanes
    # wpw_ref:   (C_out, C_in)         pointwise (1x1) weights
    # scale_ref: (C_out, 1)            folded BatchNorm scale
    # shift_ref: (C_out, 1)            folded BatchNorm shift
    # o_ref:     (C_out, H_out*W_out)  lane-dense output tile
    C_in = x_ref.shape[-1]

    # ReLU in native dtype (zero spatial padding commutes with ReLU).
    x = jnp.maximum(x_ref[...], 0.0)

    # Depthwise dilated conv: static unroll over K*K taps, f32 accumulation.
    # Each tap is a shifted spatial window multiplied by a per-channel weight
    # broadcast along the lane axis (pure VPU work).
    wdw = wdw_ref[...]                                   # (K*K, C_in)
    acc = jnp.zeros((H_out, W_out, C_in), jnp.float32)
    for kh in range(K):
        for kw in range(K):
            h0 = kh * dilation
            w0 = kw * dilation
            # TODO(synk): stride > 1 relies on Mosaic strided-slice lowering;
            # the test exercises stride == 1 (plain contiguous slices).
            tap = x[h0:h0 + (H_out - 1) * stride + 1:stride,
                    w0:w0 + (W_out - 1) * stride + 1:stride, :]
            t = kh * K + kw
            w_tap = wdw[t:t + 1, :][None]                # (1, 1, C_in)
            acc = acc + (tap * w_tap).astype(jnp.float32)

    # (H_out, W_out, C_in) -> (H_out*W_out, C_in): merges leading dims only
    # (lane dim untouched), cheap relayout.
    dw = acc.reshape(H_out * W_out, C_in)

    # Pointwise 1x1 conv on the MXU: contract C_in of both operands
    # (A @ B^T pattern) -> (C_out, H_out*W_out), lane-dense result.
    y = jax.lax.dot_general(
        wpw_ref[...].astype(jnp.float32), dw,
        dimension_numbers=(((1,), (1,)), ((), ())),
        preferred_element_type=jnp.float32)

    # Folded inference-mode BatchNorm: per-output-channel scale + shift.
    o_ref[...] = (y * scale_ref[...] + shift_ref[...]).astype(o_ref.dtype)


def dilconv(x, w_dw, w_pw, gamma, beta, running_mean, running_var, *,
            stride, padding, dilation, eps=1e-5):
    """DilConv forward.

    x: (B, C_in, H, W); w_dw: (C_in, 1, K, K); w_pw: (C_out, C_in, 1, 1);
    gamma/beta/running_mean/running_var: (C_out,).
    """
    B, C_in, H, W = x.shape
    C_out = w_pw.shape[0]
    K = w_dw.shape[-1]

    H_pad, W_pad = H + 2 * padding, W + 2 * padding
    H_out = (H_pad - dilation * (K - 1) - 1) // stride + 1
    W_out = (W_pad - dilation * (K - 1) - 1) // stride + 1
    HWo = H_out * W_out

    # Layout plumbing in the wrapper: NCHW -> NHWC + spatial zero-pad.
    x_nhwc = jnp.transpose(x, (0, 2, 3, 1))
    x_nhwc = jnp.pad(x_nhwc, ((0, 0), (padding, padding),
                              (padding, padding), (0, 0)))

    # Weight layouts for the kernel.
    wdw2 = jnp.transpose(w_dw.reshape(C_in, K * K), (1, 0))     # (K*K, C_in)
    wpw2 = w_pw.reshape(C_out, C_in)                            # (C_out, C_in)

    # Fold inference-mode BatchNorm into per-channel scale/shift.
    # TODO(synk): training-mode BN (batch statistics) is not implemented here.
    inv_std = 1.0 / jnp.sqrt(running_var + eps)
    scale = (gamma * inv_std).reshape(C_out, 1)
    shift = (beta - running_mean * gamma * inv_std).reshape(C_out, 1)

    itemsize = jnp.dtype(x.dtype).itemsize
    in_bytes = H_pad * W_pad * C_in * itemsize
    out_bytes = C_out * HWo * itemsize
    w_bytes = (wdw2.size + wpw2.size + 2 * C_out) * itemsize
    vmem_limit = int(min(64 * 2**20,
                         max(16 * 2**20,
                             4 * (2 * (in_bytes + out_bytes) + w_bytes))))

    cost = pl.CostEstimate(
        flops=2 * B * HWo * (C_in * K * K + C_out * C_in + C_out),
        transcendentals=0,
        bytes_accessed=B * (in_bytes + out_bytes) + w_bytes)

    kernel = functools.partial(_dilconv_kernel, K=K, stride=stride,
                               dilation=dilation, H_out=H_out, W_out=W_out)

    out = pl.pallas_call(
        kernel,
        out_shape=jax.ShapeDtypeStruct((B, C_out, HWo), x.dtype),
        grid_spec=pltpu.PrefetchScalarGridSpec(
            num_scalar_prefetch=0,
            grid=(B,),
            in_specs=[
                pl.BlockSpec((None, H_pad, W_pad, C_in),
                             lambda b: (b, 0, 0, 0)),            # per-batch x
                pl.BlockSpec((K * K, C_in), lambda b: (0, 0)),   # depthwise w
                pl.BlockSpec((C_out, C_in), lambda b: (0, 0)),   # pointwise w
                pl.BlockSpec((C_out, 1), lambda b: (0, 0)),      # BN scale
                pl.BlockSpec((C_out, 1), lambda b: (0, 0)),      # BN shift
            ],
            out_specs=pl.BlockSpec((None, C_out, HWo), lambda b: (b, 0, 0)),
        ),
        compiler_params=pltpu.CompilerParams(
            dimension_semantics=("parallel",),
            vmem_limit_bytes=vmem_limit),
        cost_estimate=cost,
    )(x_nhwc, wdw2, wpw2, scale, shift)

    return out.reshape(B, C_out, H_out, W_out)


def dilconv_ref(x, w_dw, w_pw, gamma, beta, running_mean, running_var, *,
                stride, padding, dilation, eps=1e-5):
    """Pure-JAX reference (ReLU -> depthwise dilated conv -> 1x1 conv -> BN)."""
    C_in = x.shape[1]
    xr = jnp.maximum(x, 0.0)
    dw = jax.lax.conv_general_dilated(
        xr, w_dw, window_strides=(stride, stride),
        padding=[(padding, padding), (padding, padding)],
        rhs_dilation=(dilation, dilation),
        dimension_numbers=("NCHW", "OIHW", "NCHW"),
        feature_group_count=C_in)
    pw = jax.lax.conv_general_dilated(
        dw, w_pw, window_strides=(1, 1), padding="VALID",
        dimension_numbers=("NCHW", "OIHW", "NCHW"))
    scale = gamma / jnp.sqrt(running_var + eps)
    shift = beta - running_mean * scale
    return pw * scale[None, :, None, None] + shift[None, :, None, None]


if __name__ == "__main__":
    key = jax.random.PRNGKey(0)
    # Classic DilConv 3x3 config (dilation=2, padding=2 keeps spatial size).
    B, C_in, C_out, H, W = 2, 8, 16, 16, 16
    K, stride, padding, dilation = 3, 1, 2, 2

    kx, kd, kp, kg, kb, km, kv = jax.random.split(key, 7)
    x = jax.random.normal(kx, (B, C_in, H, W), dtype=jnp.float32)
    w_dw = 0.1 * jax.random.normal(kd, (C_in, 1, K, K), dtype=jnp.float32)
    w_pw = 0.1 * jax.random.normal(kp, (C_out, C_in, 1, 1), dtype=jnp.float32)
    gamma = 1.0 + 0.1 * jax.random.normal(kg, (C_out,), dtype=jnp.float32)
    beta = 0.1 * jax.random.normal(kb, (C_out,), dtype=jnp.float32)
    running_mean = 0.1 * jax.random.normal(km, (C_out,), dtype=jnp.float32)
    running_var = jnp.abs(
        1.0 + 0.1 * jax.random.normal(kv, (C_out,), dtype=jnp.float32))

    out = dilconv(x, w_dw, w_pw, gamma, beta, running_mean, running_var,
                  stride=stride, padding=padding, dilation=dilation)
    out = jax.block_until_ready(out)

    ref = dilconv_ref(x, w_dw, w_pw, gamma, beta, running_mean, running_var,
                      stride=stride, padding=padding, dilation=dilation)
    assert out.shape == ref.shape == (B, C_out, H, W)
    err = jnp.max(jnp.abs(out - ref))
    assert jnp.allclose(out, ref, atol=1e-4, rtol=1e-4), f"mismatch: {err}"

    print("KERNEL_OK")
</pallas_src>

<mosaic_0001>
module attributes {stable_mosaic.version = 11 : i64} {
  func.func @_dilconv_kernel(%arg0: i32, %arg1: memref<1x20x20x8xf32, #tpu.memory_space<vmem>>, %arg2: memref<9x8xf32, #tpu.memory_space<vmem>>, %arg3: memref<16x8xf32, #tpu.memory_space<vmem>>, %arg4: memref<16x1xf32, #tpu.memory_space<vmem>>, %arg5: memref<16x1xf32, #tpu.memory_space<vmem>>, %arg6: memref<1x16x256xf32, #tpu.memory_space<vmem>>) attributes {dimension_semantics = [#tpu.dimension_semantics<parallel>], iteration_bounds = array<i64: 2>, scalar_prefetch = 0 : i64, scratch_operands = 0 : i64, tpu.core_type = #tpu.core_type<tc>, window_params = [{transform_indices = @transform_0, window_bounds = array<i64: 1, 20, 20, 8>}, {pipeline_mode = #tpu.pipeline_mode<synchronous>, transform_indices = @transform_1, window_bounds = array<i64: 9, 8>}, {pipeline_mode = #tpu.pipeline_mode<synchronous>, transform_indices = @transform_2, window_bounds = array<i64: 16, 8>}, {pipeline_mode = #tpu.pipeline_mode<synchronous>, transform_indices = @transform_3, window_bounds = array<i64: 16, 1>}, {pipeline_mode = #tpu.pipeline_mode<synchronous>, transform_indices = @transform_4, window_bounds = array<i64: 16, 1>}, {transform_indices = @transform_5, window_bounds = array<i64: 1, 16, 256>}]} {
    %c0 = arith.constant 0 : index
    %c0_0 = arith.constant 0 : index
    %c0_1 = arith.constant 0 : index
    %c0_2 = arith.constant 0 : index
    %0 = vector.load %arg1[%c0, %c0_0, %c0_1, %c0_2] : memref<1x20x20x8xf32, #tpu.memory_space<vmem>>, vector<1x20x20x8xf32>
    %1 = vector.shape_cast %0 : vector<1x20x20x8xf32> to vector<20x20x8xf32>
    %cst = arith.constant 0.000000e+00 : f32
    %2 = vector.broadcast %cst : f32 to vector<20x20x8xf32>
    %3 = arith.maximumf %1, %2 : vector<20x20x8xf32>
    %c0_3 = arith.constant 0 : index
    %c0_4 = arith.constant 0 : index
    %4 = vector.load %arg2[%c0_3, %c0_4] : memref<9x8xf32, #tpu.memory_space<vmem>>, vector<9x8xf32>
    %cst_5 = arith.constant 0.000000e+00 : f32
    %5 = vector.broadcast %cst_5 : f32 to vector<16x16x8xf32>
    %6 = vector.extract_strided_slice %3 {offsets = [0, 0, 0], sizes = [16, 16, 8], strides = [1, 1, 1]} : vector<20x20x8xf32> to vector<16x16x8xf32>
    %7 = vector.extract_strided_slice %4 {offsets = [0, 0], sizes = [1, 8], strides = [1, 1]} : vector<9x8xf32> to vector<1x8xf32>
    %8 = vector.shape_cast %7 : vector<1x8xf32> to vector<1x1x8xf32>
    %9 = vector.broadcast %8 : vector<1x1x8xf32> to vector<16x16x8xf32>
    %10 = arith.mulf %6, %9 : vector<16x16x8xf32>
    %11 = arith.addf %5, %10 : vector<16x16x8xf32>
    %12 = vector.extract_strided_slice %3 {offsets = [0, 2, 0], sizes = [16, 16, 8], strides = [1, 1, 1]} : vector<20x20x8xf32> to vector<16x16x8xf32>
    %13 = vector.extract_strided_slice %4 {offsets = [1, 0], sizes = [1, 8], strides = [1, 1]} : vector<9x8xf32> to vector<1x8xf32>
    %14 = vector.shape_cast %13 : vector<1x8xf32> to vector<1x1x8xf32>
    %15 = vector.broadcast %14 : vector<1x1x8xf32> to vector<16x16x8xf32>
    %16 = arith.mulf %12, %15 : vector<16x16x8xf32>
    %17 = arith.addf %11, %16 : vector<16x16x8xf32>
    %18 = vector.extract_strided_slice %3 {offsets = [0, 4, 0], sizes = [16, 16, 8], strides = [1, 1, 1]} : vector<20x20x8xf32> to vector<16x16x8xf32>
    %19 = vector.extract_strided_slice %4 {offsets = [2, 0], sizes = [1, 8], strides = [1, 1]} : vector<9x8xf32> to vector<1x8xf32>
    %20 = vector.shape_cast %19 : vector<1x8xf32> to vector<1x1x8xf32>
    %21 = vector.broadcast %20 : vector<1x1x8xf32> to vector<16x16x8xf32>
    %22 = arith.mulf %18, %21 : vector<16x16x8xf32>
    %23 = arith.addf %17, %22 : vector<16x16x8xf32>
    %24 = vector.extract_strided_slice %3 {offsets = [2, 0, 0], sizes = [16, 16, 8], strides = [1, 1, 1]} : vector<20x20x8xf32> to vector<16x16x8xf32>
    %25 = vector.extract_strided_slice %4 {offsets = [3, 0], sizes = [1, 8], strides = [1, 1]} : vector<9x8xf32> to vector<1x8xf32>
    %26 = vector.shape_cast %25 : vector<1x8xf32> to vector<1x1x8xf32>
    %27 = vector.broadcast %26 : vector<1x1x8xf32> to vector<16x16x8xf32>
    %28 = arith.mulf %24, %27 : vector<16x16x8xf32>
    %29 = arith.addf %23, %28 : vector<16x16x8xf32>
    %30 = vector.extract_strided_slice %3 {offsets = [2, 2, 0], sizes = [16, 16, 8], strides = [1, 1, 1]} : vector<20x20x8xf32> to vector<16x16x8xf32>
    %31 = vector.extract_strided_slice %4 {offsets = [4, 0], sizes = [1, 8], strides = [1, 1]} : vector<9x8xf32> to vector<1x8xf32>
    %32 = vector.shape_cast %31 : vector<1x8xf32> to vector<1x1x8xf32>
    %33 = vector.broadcast %32 : vector<1x1x8xf32> to vector<16x16x8xf32>
    %34 = arith.mulf %30, %33 : vector<16x16x8xf32>
    %35 = arith.addf %29, %34 : vector<16x16x8xf32>
    %36 = vector.extract_strided_slice %3 {offsets = [2, 4, 0], sizes = [16, 16, 8], strides = [1, 1, 1]} : vector<20x20x8xf32> to vector<16x16x8xf32>
    %37 = vector.extract_strided_slice %4 {offsets = [5, 0], sizes = [1, 8], strides = [1, 1]} : vector<9x8xf32> to vector<1x8xf32>
    %38 = vector.shape_cast %37 : vector<1x8xf32> to vector<1x1x8xf32>
    %39 = vector.broadcast %38 : vector<1x1x8xf32> to vector<16x16x8xf32>
    %40 = arith.mulf %36, %39 : vector<16x16x8xf32>
    %41 = arith.addf %35, %40 : vector<16x16x8xf32>
    %42 = vector.extract_strided_slice %3 {offsets = [4, 0, 0], sizes = [16, 16, 8], strides = [1, 1, 1]} : vector<20x20x8xf32> to vector<16x16x8xf32>
    %43 = vector.extract_strided_slice %4 {offsets = [6, 0], sizes = [1, 8], strides = [1, 1]} : vector<9x8xf32> to vector<1x8xf32>
    %44 = vector.shape_cast %43 : vector<1x8xf32> to vector<1x1x8xf32>
    %45 = vector.broadcast %44 : vector<1x1x8xf32> to vector<16x16x8xf32>
    %46 = arith.mulf %42, %45 : vector<16x16x8xf32>
    %47 = arith.addf %41, %46 : vector<16x16x8xf32>
    %48 = vector.extract_strided_slice %3 {offsets = [4, 2, 0], sizes = [16, 16, 8], strides = [1, 1, 1]} : vector<20x20x8xf32> to vector<16x16x8xf32>
    %49 = vector.extract_strided_slice %4 {offsets = [7, 0], sizes = [1, 8], strides = [1, 1]} : vector<9x8xf32> to vector<1x8xf32>
    %50 = vector.shape_cast %49 : vector<1x8xf32> to vector<1x1x8xf32>
    %51 = vector.broadcast %50 : vector<1x1x8xf32> to vector<16x16x8xf32>
    %52 = arith.mulf %48, %51 : vector<16x16x8xf32>
    %53 = arith.addf %47, %52 : vector<16x16x8xf32>
    %54 = vector.extract_strided_slice %3 {offsets = [4, 4, 0], sizes = [16, 16, 8], strides = [1, 1, 1]} : vector<20x20x8xf32> to vector<16x16x8xf32>
    %55 = vector.extract_strided_slice %4 {offsets = [8, 0], sizes = [1, 8], strides = [1, 1]} : vector<9x8xf32> to vector<1x8xf32>
    %56 = vector.shape_cast %55 : vector<1x8xf32> to vector<1x1x8xf32>
    %57 = vector.broadcast %56 : vector<1x1x8xf32> to vector<16x16x8xf32>
    %58 = arith.mulf %54, %57 : vector<16x16x8xf32>
    %59 = arith.addf %53, %58 : vector<16x16x8xf32>
    %60 = vector.shape_cast %59 : vector<16x16x8xf32> to vector<256x8xf32>
    %c0_6 = arith.constant 0 : index
    %c0_7 = arith.constant 0 : index
    %61 = vector.load %arg3[%c0_6, %c0_7] : memref<16x8xf32, #tpu.memory_space<vmem>>, vector<16x8xf32>
    %cst_8 = arith.constant dense<0.000000e+00> : vector<16x256xf32>
    %62 = tpu.matmul %61, %60, %cst_8 {dimension_numbers = #tpu.dot_dimension_numbers<[1], [1], [0], [0], [0, 0, 1, 0], [], []>} : vector<16x8xf32>, vector<256x8xf32>, vector<16x256xf32> -> vector<16x256xf32>
    %c0_9 = arith.constant 0 : index
    %c0_10 = arith.constant 0 : index
    %63 = vector.load %arg4[%c0_9, %c0_10] : memref<16x1xf32, #tpu.memory_space<vmem>>, vector<16x1xf32>
    %64 = vector.broadcast %63 : vector<16x1xf32> to vector<16x256xf32>
    %65 = arith.mulf %62, %64 : vector<16x256xf32>
    %c0_11 = arith.constant 0 : index
    %c0_12 = arith.constant 0 : index
    %66 = vector.load %arg5[%c0_11, %c0_12] : memref<16x1xf32, #tpu.memory_space<vmem>>, vector<16x1xf32>
    %67 = vector.broadcast %66 : vector<16x1xf32> to vector<16x256xf32>
    %68 = arith.addf %65, %67 : vector<16x256xf32>
    %c0_13 = arith.constant 0 : index
    %c0_14 = arith.constant 0 : index
    %c0_15 = arith.constant 0 : index
    %69 = vector.load %arg6[%c0_13, %c0_14, %c0_15] : memref<1x16x256xf32, #tpu.memory_space<vmem>>, vector<1x16x256xf32>
    %70 = vector.shape_cast %69 : vector<1x16x256xf32> to vector<16x256xf32>
    %71 = vector.shape_cast %68 : vector<16x256xf32> to vector<1x16x256xf32>
    tpu.vector_store %arg6[%c0_13, %c0_14, %c0_15], %71 {strides = array<i32>} : memref<1x16x256xf32, #tpu.memory_space<vmem>>, vector<1x16x256xf32>,
    return
  }
  func.func @transform_0(%arg0: i32) -> (i32, i32, i32, i32) {
    %c0_i32 = arith.constant 0 : i32
    %c0_i32_0 = arith.constant 0 : i32
    %c0_i32_1 = arith.constant 0 : i32
    %c0_i32_2 = arith.constant 0 : i32
    return %arg0, %c0_i32, %c0_i32_0, %c0_i32_1 : i32, i32, i32, i32
  }
  func.func @transform_1(%arg0: i32) -> (i32, i32) {
    %c0_i32 = arith.constant 0 : i32
    %c0_i32_0 = arith.constant 0 : i32
    %c0_i32_1 = arith.constant 0 : i32
    return %c0_i32, %c0_i32_0 : i32, i32
  }
  func.func @transform_2(%arg0: i32) -> (i32, i32) {
    %c0_i32 = arith.constant 0 : i32
    %c0_i32_0 = arith.constant 0 : i32
    %c0_i32_1 = arith.constant 0 : i32
    return %c0_i32, %c0_i32_0 : i32, i32
  }
  func.func @transform_3(%arg0: i32) -> (i32, i32) {
    %c0_i32 = arith.constant 0 : i32
    %c0_i32_0 = arith.constant 0 : i32
    %c0_i32_1 = arith.constant 0 : i32
    return %c0_i32, %c0_i32_0 : i32, i32
  }
  func.func @transform_4(%arg0: i32) -> (i32, i32) {
    %c0_i32 = arith.constant 0 : i32
    %c0_i32_0 = arith.constant 0 : i32
    %c0_i32_1 = arith.constant 0 : i32
    return %c0_i32, %c0_i32_0 : i32, i32
  }
  func.func @transform_5(%arg0: i32) -> (i32, i32, i32) {
    %c0_i32 = arith.constant 0 : i32
    %c0_i32_0 = arith.constant 0 : i32
    %c0_i32_1 = arith.constant 0 : i32
    return %arg0, %c0_i32, %c0_i32_0 : i32, i32, i32
  }
}

</mosaic_0001>

<bundles_post_ra>
// kernel: tpu_custom_call.1
= control target key start
LH: loop header
LB: loop body
LE: loop exit
PB: predicated region body
PF: predicated region fallthrough
CT: control target
= control target key end

     0   :  { %10 = vsyncpa [#allocation3], 0  ;;  %s4441_s0 = inlined_call_operand.vmem [shape: f32[2,20,20,8], index: 0, kind: input, shape index: {}]   ;;  %s4442_s1 = inlined_call_operand.vmem [shape: f32[9,8], index: 1, kind: input, shape index: {}]   ;;  %s4443_s2 = inlined_call_operand.vmem [shape: f32[16,8], index: 2, kind: input, shape index: {}]   ;;  %s4444_s3 = inlined_call_operand.vmem [shape: f32[16,1], index: 3, kind: input, shape index: {}]   ;;  %s4445_s4 = inlined_call_operand.vmem [shape: f32[16,1], index: 4, kind: input, shape index: {}]   ;;  %s4446_s5 = inlined_call_operand.hbm [shape: f32[2,16,256], index: 5, kind: output, shape index: {}]  }
   0x1   :  { %12 = vsyncpa [#allocation3 + $0x1], 0  ;;  %s2478_s18 = smov 0   ;;  %s2480_s19 = smov 0  }
   0x2   :  { %s2482_s20 = smov 0   ;;  %s2484_s21 = smov 0  }
   0x3 LB: > { %s2499_s22 = sadd.s32 4294967295, %s2443_s21   ;;  %s2253_s23 = sadd.s32 4294967294, %s2443_s21   ;;  %s2443_s21 = sphi %s2484_s21, %s4690_s21   ;;  %s2439_s20 = sphi %s2482_s20, %s4689_s20   ;;  %s2435_s19 = sphi %s2480_s19, %s4688_s19   ;;  %s2431_s18 = sphi %s2478_s18, %s4687_s18  }
   0x4   : > { %s2503_s24 = sadd.s32 1, %s2443_s21   ;;  %s135_s25 = sadd.s32 1, %s2439_s20 }
   0x5   : > { %s132_s26 = ssub.s32 %s2443_s21, %s2503_s24  ;;  %p145_p0 = scmp.ne.s32.totalorder %s2439_s20, %s2435_s19 }
   0x6   : > { %p133_p1 = scmp.eq.s32.totalorder %s132_s26, 0  ;;  %p146_p2 = scmp.eq.s32.totalorder %s2499_s22, 1 }
   0x7   : > { %p151_p3 = scmp.ne.s32.totalorder %s2435_s19, %s2431_s18  ;;  %p152_p4 = scmp.eq.s32.totalorder %s2253_s23, 1 }
   0x8   : > { %s2514_s27 = scalar_select %p133_p1, %s2439_s20, %s135_s25  }
   0x9   : > { %p2516_p5 = por %p146_p2, %p145_p0  ;;  %p2520_p6 = por %p152_p4, %p151_p3 }
   0xa   : > { %p2256_p7 = scmp.ge.s32.totalorder %s2443_s21, 1  ;;  %p190_p8 = scmp.lt.s32.totalorder %s2443_s21, 3 }
   0xc   : > { %p191_p9 = pnand %p2256_p7, %p190_p8 }
   0xe   : > { %194 = sbr.rel (%p191_p9) target bundleno = 492 (0x1ec), region = 40 }
  0x13   : > { %p218_p10 = scmp.lt.s32.totalorder %s2499_s22, 1  ;;  %v343_v0 = vld [vmem:[%s4442_s1] sm:$0xff]  ;;  %vm507_vm0 = vcmask 1045504   ;;  %vm749_vm1 = vcmask 1043456   ;;  %v2601_v32 = vld [vmem:[%s4442_s1 + $0x8] ss:$0 sm:$0xff] }
  0x14   : > { %v2531_v1 = vperm.slane %v343_v0, 0  ;;  %v2533_v2 = vperm.slane %v343_v0, 1  ;;  %v2540_v3 = vperm.slane %v343_v0, 2  ;;  %v2542_v4 = vperm.slane %v343_v0, 3  ;;  %s215_s14 = sand.u32 1, %s2435_s19   ;;  %s2300_s17 = sshll.u32 %s2499_s22, 5 }
  0x15   : > { %s219_s30 = scalar_select %p218_p10, %s2499_s22, 1  ;;  %v2544_v5 = vperm.slane %v343_v0, 4  ;;  %v2546_v6 = vperm.slane %v343_v0, 5  ;;  %v2551_v10 = vperm.slane %v343_v0, 6  ;;  %v2553_v11 = vperm.slane %v343_v0, 7 }
  0x16   : > { %vm1990_vm2 = vcmask 64512   ;;  %s2257_s15 = sshll.u32 %s215_s14, 5  ;;  %s2187_s26 = scalar_lea.hbm %s4446_s5, %s2300_s17 }
  0x17   : > { %s2333_s8 = smul.u32 480, %s219_s30  ;;  %s217_s16 = scalar_lea.vmem [#allocation2], %s2257_s15 }
  0x18   : > { %s2188_s30 = sshll.u32 %s217_s16, 4  ;;  %s2190_s6 = sshll.u32 %s2187_s26, 4  ;;  %s2189_s30 = int_to_ptr.vmem [resolvable:$true] %s2188_s30  ;;  %s2191_s6 = int_to_ptr.hbm [resolvable:$true] %s2190_s6 }
  0x19   : > { %s2538_s11 = scalar_lea.vmem %s4441_s0, %s2333_s8  ;;  %s2176_s22 = scalar_lea.sflag [#allocation3], %s215_s14 }
  0x1a   : > { %v245_v7 = vld [vmem:[%s2538_s11 + $0xb0] sm:$0xff]  ;;  %v246_v8 = vld [vmem:[%s2538_s11 + $0xb8] sm:$0xf]  ;;  %v251_v9 = vld [vmem:[%s2538_s11 + $0xe0] sm:$0xff]  ;;  %s2395_s7 = sshra.s32 %s2191_s6, 4  ;;  %s2396_s7 = int_to_ptr.hbm [resolvable:$true] %s2395_s7 }
  0x1b   : > { %v252_v12 = vld [vmem:[%s2538_s11 + $0xe8] sm:$0xf]  ;;  %v257_v13 = vld [vmem:[%s2538_s11 + $0x110] sm:$0xff]  ;;  %v258_v14 = vld [vmem:[%s2538_s11 + $0x118] sm:$0xf]  ;;  %v2558_v15 = vmax.f32 %v245_v7, 0.0  ;;  %p2402_p0 = scmp.lt.s32.totalorder %s2396_s7, %s4446_s5 }
  0x1c   : > { %v2560_v16 = vmax.f32 %v246_v8, 0.0  ;;  %v2562_v17 = vmax.f32 %v251_v9, 0.0  ;;  %v2564_v18 = vmax.f32 %v252_v12, 0.0  ;;  %v2566_v19 = vmax.f32 %v257_v13, 0.0  ;;  %v269_v41 = vld [vmem:[%s2538_s11 + $0x170] sm:$0xff]  ;;  %v275_v47 = vld [vmem:[%s2538_s11 + $0x1a0] sm:$0xff] }
  0x1d   : > { %v2568_v20 = vmax.f32 %v258_v14, 0.0  ;;  %v361_v21 = vmul.f32 %v2531_v1, %v2558_v15  ;;  %v2574_v22 = vmul.f32 %v2533_v2, %v2558_v15  ;;  %v2578_v23 = vmul.f32 %v2540_v3, %v2558_v15  ;;  %v270_v46 = vld [vmem:[%s2538_s11 + $0x178] sm:$0xf]  ;;  %v276_v52 = vld [vmem:[%s2538_s11 + $0x1a8] sm:$0xf]  ;;  %v281_v53 = vld [vmem:[%s2538_s11 + $0x1d0] sm:$0xff] }
  0x1e   : > { %4567 = vst [vmem:[#allocation5_spill] sm:$0xff] %v2562_v17  ;;  %v434_v24 = vmul.f32 %v2533_v2, %v2560_v16  ;;  %v676_v25 = vmul.f32 %v2540_v3, %v2560_v16  ;;  %v910_v26 = vmul.f32 %v2542_v4, %v2562_v17  ;;  %v2588_v27 = vmul.f32 %v2544_v5, %v2562_v17  ;;  %v282_v57 = vld [vmem:[%s2538_s11 + $0x1d8] sm:$0xf]  ;;  %s2397_s8 = scalar_lea.hbm %s2396_s7, 32 }
  0x1f   : > { %4568 = vst [vmem:[#allocation6_spill] sm:$0xff] %v2564_v18  ;;  %v544_v28 = vrot.slane %v2574_v22, 2  ;;  %v786_v29 = vrot.slane %v2578_v23, 4  ;;  %v983_v30 = vmul.f32 %v2544_v5, %v2564_v18  ;;  %v2596_v31 = vmul.f32 %v2546_v6, %v2562_v17  ;;  %p2398_p11 = scmp.ne.s32.totalorder %s2396_s7, %s2397_s8 }
  0x20   : > { %4569 = vst [vmem:[#allocation7_spill] sm:$0xff] %v2566_v19  ;;  %v546_v33 = vrot.slane %v434_v24, 2  ;;  %v788_v34 = vrot.slane %v676_v25, 4  ;;  %v1092_v35 = vrot.slane %v2588_v27, 2  ;;  %v1224_v36 = vmul.f32 %v2546_v6, %v2564_v18 }
  0x21   : > { %4570 = vst [vmem:[#allocation8_spill] sm:$0xff] %v2568_v20  ;;  %v1094_v37 = vrot.slane %v983_v30, 2  ;;  %v1333_v38 = vrot.slane %v2596_v31, 4  ;;  %v1457_v39 = vmul.f32 %v2551_v10, %v2566_v19  ;;  %v2611_v40 = vmul.f32 %v2553_v11, %v2566_v19  ;;  %p2399_p12 = pnand %p2398_p11, %p2516_p5 }
  0x22   : > { %v547_v42 = vsel %vm507_vm0, %v544_v28, %v546_v33  ;;  %v789_v43 = vsel %vm749_vm1, %v786_v29, %v788_v34  ;;  %v1335_v44 = vrot.slane %v1224_v36, 4  ;;  %v1530_v45 = vmul.f32 %v2553_v11, %v2568_v20 }
  0x23   : > { %v635_v48 = vadd.f32 %v547_v42, %v361_v21  ;;  %v1095_v49 = vsel %vm507_vm0, %v1092_v35, %v1094_v37  ;;  %v1639_v50 = vrot.slane %v2611_v40, 2  ;;  %v2630_v51 = vmul.f32 %v2601_v32, %v2566_v19  ;;  %p2400_p13 = pneg %p2399_p12 }
  0x24   : > { %v1336_v54 = vsel %vm749_vm1, %v1333_v38, %v1335_v44  ;;  %v1641_v55 = vrot.slane %v1530_v45, 2  ;;  %v1771_v56 = vmul.f32 %v2601_v32, %v2568_v20  ;;  %v2640_v58 = vmax.f32 %v269_v41, 0.0 }
  0x25   : > { %v877_v59 = vadd.f32 %v789_v43, %v635_v48  ;;  %v1880_v60 = vrot.slane %v2630_v51, 4  ;;  %v2643_v61 = vmax.f32 %v270_v46, 0.0  ;;  %v2645_v62 = vmax.f32 %v275_v47, 0.0 }
  0x26   : > { %v1642_v63 = vsel %vm507_vm0, %v1639_v50, %v1641_v55  ;;  %v1882_v0 = vrot.slane %v1771_v56, 4  ;;  %v2650_v7 = vmax.f32 %v276_v52, 0.0  ;;  %v341_v8 = vmax.f32 %v281_v53, 0.0 }
  0x27   : > { %v942_v9 = vadd.f32 %v910_v26, %v877_v59  ;;  %v342_v12 = vmax.f32 %v282_v57, 0.0  ;;  %v377_v13 = vmul.f32 %v2531_v1, %v2640_v58  ;;  %v2656_v14 = vmul.f32 %v2533_v2, %v2640_v58  ;;  %v244_v59 = vld [vmem:[%s2538_s11 + $0xa8] sm:$0xff] }
  0x28   : > { %v1883_v21 = vsel %vm749_vm1, %v1880_v60, %v1882_v0  ;;  %v458_v24 = vmul.f32 %v2533_v2, %v2643_v61  ;;  %v2665_v25 = vmul.f32 %v2540_v3, %v2640_v58  ;;  %v700_v26 = vmul.f32 %v2540_v3, %v2643_v61 }
  0x29   : > { %v1183_v30 = vadd.f32 %v1095_v49, %v942_v9  ;;  %v4449_v33 = vrot.slane %v2656_v14, 2  ;;  %v926_v34 = vmul.f32 %v2542_v4, %v2645_v62  ;;  %v2674_v36 = vmul.f32 %v2544_v5, %v2645_v62 }
  0x2a   : > { %v586_v37 = vrot.slane %v458_v24, 2  ;;  %v4448_v41 = vrot.slane %v2665_v25, 4  ;;  %v828_v42 = vrot.slane %v700_v26, 4  ;;  %v1007_v43 = vmul.f32 %v2544_v5, %v2650_v7 }
  0x2b   : > { %v1424_v44 = vadd.f32 %v1336_v54, %v1183_v30  ;;  %v4447_v45 = vrot.slane %v2674_v36, 2  ;;  %v2682_v46 = vmul.f32 %v2546_v6, %v2645_v62  ;;  %v1248_v47 = vmul.f32 %v2546_v6, %v2650_v7  ;;  %v250_v30 = vld [vmem:[%s2538_s11 + $0xd8] sm:$0xff] }
  0x2c   : > { %v587_v48 = vsel %vm507_vm0, %v4449_v33, %v586_v37  ;;  %v829_v49 = vsel %vm749_vm1, %v4448_v41, %v828_v42  ;;  %v1134_v52 = vrot.slane %v1007_v43, 2  ;;  %v1473_v53 = vmul.f32 %v2551_v10, %v341_v8  ;;  %v256_v43 = vld [vmem:[%s2538_s11 + $0x108] sm:$0xff] }
  0x2d   : > { %v1489_v54 = vadd.f32 %v1457_v39, %v1424_v44  ;;  %v651_v55 = vadd.f32 %v587_v48, %v377_v13  ;;  %v4452_v56 = vrot.slane %v2682_v46, 4  ;;  %v1375_v57 = vrot.slane %v1248_v47, 4 }
  0x2e   : > { %v1135_v0 = vsel %vm507_vm0, %v4447_v45, %v1134_v52  ;;  %v2699_v9 = vmul.f32 %v2553_v11, %v341_v8  ;;  %v1554_v24 = vmul.f32 %v2553_v11, %v342_v12  ;;  %v2703_v26 = vmul.f32 %v2601_v32, %v341_v8  ;;  %v268_v45 = vld [vmem:[%s2538_s11 + $0x168] sm:$0xff] }
  0x2f   : > { %v1730_v39 = vadd.f32 %v1642_v63, %v1489_v54  ;;  %v893_v13 = vadd.f32 %v829_v49, %v651_v55  ;;  %v1376_v37 = vsel %vm749_vm1, %v4452_v56, %v1375_v57  ;;  %v1795_v42 = vmul.f32 %v2601_v32, %v342_v12 }
  0x30   : > { %v4451_v44 = vrot.slane %v2699_v9, 2  ;;  %v1681_v47 = vrot.slane %v1554_v24, 2  ;;  %v4450_v48 = vrot.slane %v2703_v26, 4  ;;  %v2713_v52 = vmax.f32 %v244_v59, 0.0 }
  0x31   : > { %v1971_v8 = vadd.f32 %v1883_v21, %v1730_v39  ;;  %v958_v41 = vadd.f32 %v926_v34, %v893_v13  ;;  %v1922_v33 = vrot.slane %v1795_v42, 4  ;;  %v2716_v63 = vmax.f32 %v250_v30, 0.0 }
  0x32   : > { %4571 = vst [vmem:[#allocation9_spill] sm:$0xff] %v2713_v52  ;;  %v1682_v49 = vsel %vm507_vm0, %v4451_v44, %v1681_v47  ;;  %v2721_v54 = vmax.f32 %v256_v43, 0.0  ;;  %v360_v12 = vmul.f32 %v2531_v1, %v2713_v52  ;;  %v432_v55 = vmul.f32 %v2533_v2, %v2713_v52 }
  0x33   : > { %4572 = vst [vmem:[#allocation10_spill] sm:$0xff] %v2716_v63  ;;  %2259 = vmatpush.xpose.msk.msra.mxu0 %vm1990_vm2, %v1971_v8  ;;  %2301 = vmatpush.xpose.msk.msra.mxu2 %vm1990_vm2, %v1971_v8  ;;  %v1199_v21 = vadd.f32 %v1135_v0, %v958_v41  ;;  %v1923_v34 = vsel %vm749_vm1, %v4450_v48, %v1922_v33  ;;  %v2734_v59 = vmax.f32 %v268_v45, 0.0  ;;  %v274_v45 = vld [vmem:[%s2538_s11 + $0x198] sm:$0xff]  ;;  %v280_v48 = vld [vmem:[%s2538_s11 + $0x1c8] sm:$0xff] }
  0x34   : > { %4573 = vst [vmem:[#allocation11_spill] sm:$0xff] %v2721_v54  ;;  %v674_v57 = vmul.f32 %v2540_v3, %v2713_v52  ;;  %v543_v24 = vrot.slane %v432_v55, 2  ;;  %v909_v30 = vmul.f32 %v2542_v4, %v2716_v63  ;;  %v981_v39 = vmul.f32 %v2544_v5, %v2716_v63 }
  0x35   : > { %v1222_v41 = vmul.f32 %v2546_v6, %v2716_v63  ;;  %v1440_v0 = vadd.f32 %v1376_v37, %v1199_v21  ;;  %v1456_v33 = vmul.f32 %v2551_v10, %v2721_v54  ;;  %v1528_v42 = vmul.f32 %v2553_v11, %v2721_v54 }
  0x36   : > { %v785_v13 = vrot.slane %v674_v57, 4  ;;  %v545_v43 = vsel %vm507_vm0, %v543_v24, %v544_v28  ;;  %v1091_v47 = vrot.slane %v981_v39, 2  ;;  %v1769_v55 = vmul.f32 %v2601_v32, %v2721_v54 }
  0x37   : > { %v1332_v8 = vrot.slane %v1222_v41, 4  ;;  %v1505_v44 = vadd.f32 %v1473_v53, %v1440_v0  ;;  %v634_v37 = vadd.f32 %v545_v43, %v360_v12  ;;  %v1638_v57 = vrot.slane %v1528_v42, 2  ;;  %v243_v42 = vld [vmem:[%s2538_s11 + $0xa0] sm:$0xf] }
  0x38   : > { %v787_v21 = vsel %vm749_vm1, %v785_v13, %v786_v29  ;;  %v1093_v56 = vsel %vm507_vm0, %v1091_v47, %v1092_v35  ;;  %v1879_v28 = vrot.slane %v1769_v55, 4  ;;  %v2762_v24 = vmax.f32 %v274_v45, 0.0  ;;  %v248_v45 = vld [vmem:[%s2538_s11 + $0xc8] sm:$0xff] }
  0x39   : > { %v1334_v22 = vsel %vm749_vm1, %v1332_v8, %v1333_v38  ;;  %v1746_v39 = vadd.f32 %v1682_v49, %v1505_v44  ;;  %v876_v53 = vadd.f32 %v787_v21, %v634_v37  ;;  %v1640_v23 = vsel %vm507_vm0, %v1638_v57, %v1639_v50  ;;  %v249_v21 = vld [vmem:[%s2538_s11 + $0xd0] sm:$0xf] }
  0x3a   : > { %v340_v29 = vmax.f32 %v280_v48, 0.0  ;;  %v1881_v27 = vsel %vm749_vm1, %v1879_v28, %v1880_v60  ;;  %v376_v31 = vmul.f32 %v2531_v1, %v2734_v59  ;;  %v456_v35 = vmul.f32 %v2533_v2, %v2734_v59  ;;  %v242_v60 = vld [vmem:[%s2538_s11 + $0x98] sm:$0xff] }
  0x3b   : > { %v698_v38 = vmul.f32 %v2540_v3, %v2734_v59  ;;  %v1987_v44 = vadd.f32 %v1923_v34, %v1746_v39  ;;  %v941_v40 = vadd.f32 %v909_v30, %v876_v53  ;;  %v925_v50 = vmul.f32 %v2542_v4, %v2762_v24 }
  0x3c   : > { %v1005_v51 = vmul.f32 %v2544_v5, %v2762_v24  ;;  %v583_v48 = vrot.slane %v456_v35, 2  ;;  %v1246_v12 = vmul.f32 %v2546_v6, %v2762_v24  ;;  %v1472_v41 = vmul.f32 %v2551_v10, %v340_v29  ;;  %v254_v35 = vld [vmem:[%s2538_s11 + $0xf8] sm:$0xff] }
  0x3d   : > { %v825_v49 = vrot.slane %v698_v38, 4  ;;  %2277 = vmatpush.xpose.msk.msra.mxu1 %vm1990_vm2, %v1987_v44  ;;  %2317 = vmatpush.xpose.msk.msra.mxu3 %vm1990_vm2, %v1987_v44  ;;  %v1182_v34 = vadd.f32 %v1093_v56, %v941_v40  ;;  %v1552_v0 = vmul.f32 %v2553_v11, %v340_v29  ;;  %v1793_v13 = vmul.f32 %v2601_v32, %v340_v29  ;;  %v255_v38 = vld [vmem:[%s2538_s11 + $0x100] sm:$0xf] }
  0x3e   : > { %v1131_v30 = vrot.slane %v1005_v51, 2  ;;  %v4574_v43 = vrot.slane %v2656_v14, 2  ;;  %v4575_v8 = vrot.slane %v2665_v25, 4  ;;  %v1372_v37 = vrot.slane %v1246_v12, 4 }
  0x3f   : > { %v2797_v57 = vmax.f32 %v242_v60, 0.0  ;;  %v1423_v56 = vadd.f32 %v1334_v22, %v1182_v34  ;;  %v4576_v39 = vrot.slane %v2674_v36, 2  ;;  %v1678_v29 = vrot.slane %v1552_v0, 2 }
  0x40   : > { %v585_v47 = vsel %vm507_vm0, %v583_v48, %v4574_v43  ;;  %v827_v55 = vsel %vm749_vm1, %v825_v49, %v4575_v8  ;;  %v4577_v14 = vrot.slane %v2682_v46, 4  ;;  %v1919_v25 = vrot.slane %v1793_v13, 4 }
  0x41   : > { %v650_v28 = vadd.f32 %v585_v47, %v376_v31  ;;  %v1133_v53 = vsel %vm507_vm0, %v1131_v30, %v4576_v39  ;;  %v2807_v40 = vmax.f32 %v243_v42, 0.0  ;;  %v2809_v51 = vmax.f32 %v248_v45, 0.0 }
  0x42   : > { %v1374_v44 = vsel %vm749_vm1, %v1372_v37, %v4577_v14  ;;  %v1488_v60 = vadd.f32 %v1456_v33, %v1423_v56  ;;  %v4579_v31 = vrot.slane %v2699_v9, 2  ;;  %v2814_v48 = vmax.f32 %v249_v21, 0.0 }
  0x43   : > { %4578 = vst [vmem:[#allocation12_spill] sm:$0xff] %v2809_v51  ;;  %v892_v22 = vadd.f32 %v827_v55, %v650_v28  ;;  %v4581_v49 = vrot.slane %v2703_v26, 4  ;;  %v2819_v12 = vmax.f32 %v254_v35, 0.0  ;;  %v2821_v34 = vmax.f32 %v255_v38, 0.0 }
  0x44   : > { %v1680_v36 = vsel %vm507_vm0, %v1678_v29, %v4579_v31  ;;  %4580 = vst [vmem:[#allocation13_spill] sm:$0xff] %v2814_v48  ;;  %v359_v30 = vmul.f32 %v2531_v1, %v2797_v57  ;;  %v1729_v33 = vadd.f32 %v1640_v23, %v1488_v60  ;;  %v2827_v9 = vmul.f32 %v2533_v2, %v2797_v57 }
  0x45   : > { %v1921_v46 = vsel %vm749_vm1, %v1919_v25, %v4581_v49  ;;  %4582 = vst [vmem:[#allocation14_spill] sm:$0xff] %v2819_v12  ;;  %v957_v0 = vadd.f32 %v925_v50, %v892_v22  ;;  %v431_v13 = vmul.f32 %v2533_v2, %v2807_v40  ;;  %v2833_v26 = vmul.f32 %v2540_v3, %v2797_v57  ;;  %v266_v50 = vld [vmem:[%s2538_s11 + $0x158] sm:$0xff]  ;;  %v267_v49 = vld [vmem:[%s2538_s11 + $0x160] sm:$0xf] }
  0x46   : > { %4583 = vst [vmem:[#allocation15_spill] sm:$0xff] %v2821_v34  ;;  %v673_v42 = vmul.f32 %v2540_v3, %v2807_v40  ;;  %v908_v45 = vmul.f32 %v2542_v4, %v2809_v51  ;;  %v2841_v23 = vmul.f32 %v2544_v5, %v2809_v51  ;;  %v1970_v43 = vadd.f32 %v1881_v27, %v1729_v33 }
  0x47   : > { %v1198_v47 = vadd.f32 %v1133_v53, %v957_v0  ;;  %v4458_v8 = vrot.slane %v2827_v9, 2  ;;  %v541_v55 = vrot.slane %v431_v13, 2  ;;  %v4454_v37 = vrot.slane %v2833_v26, 4  ;;  %v272_v13 = vld [vmem:[%s2538_s11 + $0x188] sm:$0xff] }
  0x48   : > { %v783_v21 = vrot.slane %v673_v42, 4  ;;  %v980_v56 = vmul.f32 %v2544_v5, %v2814_v48  ;;  %v4453_v28 = vrot.slane %v2841_v23, 2  ;;  %2260 = vmatpush.xpose.msk.msra.mxu0 %vm1990_vm2, %v1970_v43  ;;  %2302 = vmatpush.xpose.msk.msra.mxu2 %vm1990_vm2, %v1970_v43  ;;  %v2856_v53 = vmul.f32 %v2546_v6, %v2809_v51 }
  0x49   : > { %v1439_v39 = vadd.f32 %v1374_v44, %v1198_v47  ;;  %v542_v27 = vsel %vm507_vm0, %v4458_v8, %v541_v55  ;;  %v2858_v29 = vmax.f32 %v266_v50, 0.0  ;;  %v1221_v44 = vmul.f32 %v2546_v6, %v2814_v48  ;;  %v273_v55 = vld [vmem:[%s2538_s11 + $0x190] sm:$0xf] }
  0x4a   : > { %v633_v35 = vadd.f32 %v542_v27, %v359_v30  ;;  %v784_v38 = vsel %vm749_vm1, %v4454_v37, %v783_v21  ;;  %v1089_v14 = vrot.slane %v980_v56, 2  ;;  %v4457_v60 = vrot.slane %v2856_v53, 4  ;;  %v278_v21 = vld [vmem:[%s2538_s11 + $0x1b8] sm:$0xff] }
  0x4b   : > { %4584 = vst [vmem:[#allocation16_spill] sm:$0xff] %v2858_v29  ;;  %v1504_v25 = vadd.f32 %v1472_v41, %v1439_v39  ;;  %v1455_v22 = vmul.f32 %v2551_v10, %v2819_v12  ;;  %v2870_v31 = vmul.f32 %v2553_v11, %v2819_v12  ;;  %v1330_v0 = vrot.slane %v1221_v44, 4 }
  0x4c   : > { %v875_v30 = vadd.f32 %v784_v38, %v633_v35  ;;  %v1090_v33 = vsel %vm507_vm0, %v4453_v28, %v1089_v14  ;;  %v1527_v41 = vmul.f32 %v2553_v11, %v2821_v34  ;;  %v2882_v43 = vmul.f32 %v2601_v32, %v2819_v12  ;;  %v279_v35 = vld [vmem:[%s2538_s11 + $0x1c0] sm:$0xf] }
  0x4d   : > { %v1745_v42 = vadd.f32 %v1680_v36, %v1504_v25  ;;  %v4456_v50 = vrot.slane %v2870_v31, 2  ;;  %v1768_v47 = vmul.f32 %v2601_v32, %v2821_v34  ;;  %v1331_v39 = vsel %vm749_vm1, %v4457_v60, %v1330_v0 }
  0x4e   : > { %v940_v56 = vadd.f32 %v908_v45, %v875_v30  ;;  %v1636_v27 = vrot.slane %v1527_v41, 2  ;;  %v2892_v38 = vmax.f32 %v267_v49, 0.0  ;;  %v4455_v14 = vrot.slane %v2882_v43, 4 }
  0x4f   : > { %v1986_v36 = vadd.f32 %v1921_v46, %v1745_v42  ;;  %v1877_v44 = vrot.slane %v1768_v47, 4  ;;  %v2895_v25 = vmax.f32 %v272_v13, 0.0  ;;  %v2900_v45 = vmax.f32 %v273_v55, 0.0 }
  0x50   : > { %4585 = vst [vmem:[#allocation17_spill] sm:$0xff] %v2892_v38  ;;  %v1181_v28 = vadd.f32 %v1090_v33, %v940_v56  ;;  %v1637_v37 = vsel %vm507_vm0, %v4456_v50, %v1636_v27  ;;  %v338_v30 = vmax.f32 %v278_v21, 0.0  ;;  %v339_v49 = vmax.f32 %v279_v35, 0.0 }
  0x51   : > { %4586 = vst [vmem:[#allocation18_spill] sm:$0xff] %v2895_v25  ;;  %2278 = vmatpush.xpose.msk.msra.mxu1 %vm1990_vm2, %v1986_v36  ;;  %2318 = vmatpush.xpose.msk.msra.mxu3 %vm1990_vm2, %v1986_v36  ;;  %v1878_v46 = vsel %vm749_vm1, %v4455_v14, %v1877_v44  ;;  %v375_v0 = vmul.f32 %v2531_v1, %v2858_v29 }
  0x52   : > { %4587 = vst [vmem:[#allocation19_spill] sm:$0xff] %v2900_v45  ;;  %v2911_v33 = vmul.f32 %v2533_v2, %v2858_v29  ;;  %v1422_v41 = vadd.f32 %v1331_v39, %v1181_v28  ;;  %v455_v13 = vmul.f32 %v2533_v2, %v2892_v38  ;;  %v2917_v42 = vmul.f32 %v2540_v3, %v2858_v29 }
  0x53   : > { %v697_v47 = vmul.f32 %v2540_v3, %v2892_v38  ;;  %v924_v21 = vmul.f32 %v2542_v4, %v2895_v25  ;;  %v2926_v56 = vmul.f32 %v2544_v5, %v2895_v25  ;;  %v1004_v28 = vmul.f32 %v2544_v5, %v2900_v45 }
  0x54   : > { %v4468_v55 = vrot.slane %v2911_v33, 2  ;;  %v1487_v39 = vadd.f32 %v1455_v22, %v1422_v41  ;;  %v581_v27 = vrot.slane %v455_v13, 2  ;;  %v4467_v35 = vrot.slane %v2917_v42, 4 }
  0x55   : > { %v823_v36 = vrot.slane %v697_v47, 4  ;;  %v4469_v44 = vrot.slane %v2926_v56, 2  ;;  %v1129_v14 = vrot.slane %v1004_v28, 2  ;;  %v2934_v50 = vmul.f32 %v2546_v6, %v2895_v25  ;;  %v241_v47 = vld [vmem:[%s2538_s11 + $0x90] sm:$0xff] }
  0x56   : > { %v1245_v60 = vmul.f32 %v2546_v6, %v2900_v45  ;;  %v1728_v8 = vadd.f32 %v1637_v37, %v1487_v39  ;;  %v582_v22 = vsel %vm507_vm0, %v4468_v55, %v581_v27  ;;  %v1471_v13 = vmul.f32 %v2551_v10, %v338_v30  ;;  %v247_v37 = vld [vmem:[%s2538_s11 + $0xc0] sm:$0xff]  ;;  %v277_v45 = vld [vmem:[%s2538_s11 + $0x1b0] sm:$0xff] }
  0x57   : > { %v824_v41 = vsel %vm749_vm1, %v4467_v35, %v823_v36  ;;  %v649_v28 = vadd.f32 %v582_v22, %v375_v0  ;;  %v1130_v34 = vsel %vm507_vm0, %v4469_v44, %v1129_v14  ;;  %v4471_v12 = vrot.slane %v2934_v50, 4  ;;  %v253_v35 = vld [vmem:[%s2538_s11 + $0xf0] sm:$0xff] }
  0x58   : > { %v1370_v54 = vrot.slane %v1245_v60, 4  ;;  %v1969_v39 = vadd.f32 %v1878_v46, %v1728_v8  ;;  %v2952_v20 = vmul.f32 %v2553_v11, %v338_v30  ;;  %v1551_v27 = vmul.f32 %v2553_v11, %v339_v49 }
  0x59   : > { %v2956_v36 = vmul.f32 %v2601_v32, %v338_v30  ;;  %v891_v55 = vadd.f32 %v824_v41, %v649_v28  ;;  %v1792_v14 = vmul.f32 %v2601_v32, %v339_v49  ;;  %v2963_v22 = vmax.f32 %v241_v47, 0.0 }
  0x5a   : > { %v1371_v0 = vsel %vm749_vm1, %v4471_v12, %v1370_v54  ;;  %2261 = vmatpush.xpose.msk.msra.mxu0 %vm1990_vm2, %v1969_v39  ;;  %2303 = vmatpush.xpose.msk.msra.mxu2 %vm1990_vm2, %v1969_v39  ;;  %v4470_v8 = vrot.slane %v2952_v20, 2  ;;  %v1676_v60 = vrot.slane %v1551_v27, 2  ;;  %v2969_v46 = vmax.f32 %v247_v37, 0.0 }
  0x5b   : > { %4588 = vst [vmem:[#allocation20_spill] sm:$0xff] %v2963_v22  ;;  %v4476_v30 = vrot.slane %v2956_v36, 4  ;;  %v956_v41 = vadd.f32 %v924_v21, %v891_v55  ;;  %v1917_v28 = vrot.slane %v1792_v14, 4  ;;  %v2971_v44 = vmax.f32 %v253_v35, 0.0  ;;  %v265_v14 = vld [vmem:[%s2538_s11 + $0x150] sm:$0xff] }
  0x5c   : > { %4589 = vst [vmem:[#allocation21_spill] sm:$0xff] %v2969_v46  ;;  %v358_v54 = vmul.f32 %v2531_v1, %v2963_v22  ;;  %v1677_v49 = vsel %vm507_vm0, %v4470_v8, %v1676_v60  ;;  %v429_v47 = vmul.f32 %v2533_v2, %v2963_v22  ;;  %v671_v39 = vmul.f32 %v2540_v3, %v2963_v22 }
  0x5d   : > { %4590 = vst [vmem:[#allocation22_spill] sm:$0xff] %v2971_v44  ;;  %v907_v55 = vmul.f32 %v2542_v4, %v2969_v46  ;;  %v1197_v21 = vadd.f32 %v1130_v34, %v956_v41  ;;  %v1918_v35 = vsel %vm749_vm1, %v4476_v30, %v1917_v28  ;;  %v978_v37 = vmul.f32 %v2544_v5, %v2969_v46  ;;  %v271_v30 = vld [vmem:[%s2538_s11 + $0x180] sm:$0xff] }
  0x5e   : > { %v1219_v27 = vmul.f32 %v2546_v6, %v2969_v46  ;;  %v538_v60 = vrot.slane %v429_v47, 2  ;;  %v780_v8 = vrot.slane %v671_v39, 4  ;;  %v1454_v12 = vmul.f32 %v2551_v10, %v2971_v44 }
  0x5f   : > { %v1525_v19 = vmul.f32 %v2553_v11, %v2971_v44  ;;  %v1438_v34 = vadd.f32 %v1371_v0, %v1197_v21  ;;  %v1086_v41 = vrot.slane %v978_v37, 2  ;;  %v1766_v28 = vmul.f32 %v2601_v32, %v2971_v44 }
  0x60   : > { %v1327_v22 = vrot.slane %v1219_v27, 4  ;;  %v4591_v25 = vrot.slane %v2827_v9, 2  ;;  %v4592_v47 = vrot.slane %v2833_v26, 4  ;;  %v3006_v29 = vmax.f32 %v265_v14, 0.0 }
  0x61   : > { %v1633_v38 = vrot.slane %v1525_v19, 2  ;;  %v1503_v48 = vadd.f32 %v1471_v13, %v1438_v34  ;;  %v4593_v21 = vrot.slane %v2841_v23, 2  ;;  %v4594_v27 = vrot.slane %v2856_v53, 4 }
  0x62   : > { %v540_v46 = vsel %vm507_vm0, %v538_v60, %v4591_v25  ;;  %v782_v39 = vsel %vm749_vm1, %v780_v8, %v4592_v47  ;;  %v4595_v9 = vrot.slane %v2870_v31, 2  ;;  %v1874_v26 = vrot.slane %v1766_v28, 4  ;;  %v239_v28 = vld [vmem:[%s2538_s11 + $0x80] sm:$0xff] }
  0x63   : > { %v632_v0 = vadd.f32 %v540_v46, %v358_v54  ;;  %v1088_v37 = vsel %vm507_vm0, %v1086_v41, %v4593_v21  ;;  %v1329_v44 = vsel %vm749_vm1, %v1327_v22, %v4594_v27  ;;  %v3017_v60 = vmax.f32 %v271_v30, 0.0  ;;  %v240_v21 = vld [vmem:[%s2538_s11 + $0x88] sm:$0xf] }
  0x64   : > { %v1635_v25 = vsel %vm507_vm0, %v1633_v38, %v4595_v9  ;;  %v337_v19 = vmax.f32 %v277_v45, 0.0  ;;  %v1744_v8 = vadd.f32 %v1677_v49, %v1503_v48  ;;  %v374_v23 = vmul.f32 %v2531_v1, %v3006_v29 }
  0x65   : > { %v874_v13 = vadd.f32 %v782_v39, %v632_v0  ;;  %v453_v46 = vmul.f32 %v2533_v2, %v3006_v29  ;;  %v4596_v53 = vrot.slane %v2882_v43, 4  ;;  %v695_v31 = vmul.f32 %v2540_v3, %v3006_v29 }
  0x66   : > { %v923_v38 = vmul.f32 %v2542_v4, %v3017_v60  ;;  %v1002_v48 = vmul.f32 %v2544_v5, %v3017_v60  ;;  %v1985_v45 = vadd.f32 %v1918_v35, %v1744_v8  ;;  %v1243_v49 = vmul.f32 %v2546_v6, %v3017_v60 }
  0x67   : > { %v1876_v22 = vsel %vm749_vm1, %v1874_v26, %v4596_v53  ;;  %v939_v30 = vadd.f32 %v907_v55, %v874_v13  ;;  %v578_v54 = vrot.slane %v453_v46, 2  ;;  %v820_v14 = vrot.slane %v695_v31, 4 }
  0x68   : > { %v1126_v43 = vrot.slane %v1002_v48, 2  ;;  %v1470_v34 = vmul.f32 %v2551_v10, %v337_v19  ;;  %v1549_v41 = vmul.f32 %v2553_v11, %v337_v19  ;;  %2279 = vmatpush.xpose.msk.msra.mxu1 %vm1990_vm2, %v1985_v45  ;;  %2319 = vmatpush.xpose.msk.msra.mxu3 %vm1990_vm2, %v1985_v45  ;;  %v4597_v39 = vrot.slane %v2911_v33, 2 }
  0x69   : > { %v1180_v47 = vadd.f32 %v1088_v37, %v939_v30  ;;  %v1367_v35 = vrot.slane %v1243_v49, 4  ;;  %v1790_v0 = vmul.f32 %v2601_v32, %v337_v19  ;;  %v4598_v9 = vrot.slane %v2917_v42, 4 }
  0x6a   : > { %v580_v55 = vsel %vm507_vm0, %v578_v54, %v4597_v39  ;;  %v4599_v8 = vrot.slane %v2926_v56, 2  ;;  %v1673_v46 = vrot.slane %v1549_v41, 2  ;;  %v4600_v37 = vrot.slane %v2934_v50, 4 }
  0x6b   : > { %v648_v27 = vadd.f32 %v580_v55, %v374_v23  ;;  %v822_v26 = vsel %vm749_vm1, %v820_v14, %v4598_v9  ;;  %v1421_v53 = vadd.f32 %v1329_v44, %v1180_v47  ;;  %v1914_v31 = vrot.slane %v1790_v0, 4 }
  0x6c   : > { %v1128_v13 = vsel %vm507_vm0, %v1126_v43, %v4599_v8  ;;  %v1369_v33 = vsel %vm749_vm1, %v1367_v35, %v4600_v37  ;;  %v3053_v48 = vmax.f32 %v239_v28, 0.0  ;;  %v4601_v23 = vrot.slane %v2952_v20, 2 }
  0x6d   : > { %v890_v19 = vadd.f32 %v822_v26, %v648_v27  ;;  %v3058_v45 = vmax.f32 %v240_v21, 0.0  ;;  %v906_v56 = vmul.f32 %v2542_v4, %v2558_v15  ;;  %v1486_v30 = vadd.f32 %v1454_v12, %v1421_v53 }
  0x6e   : > { %v1675_v42 = vsel %vm507_vm0, %v1673_v46, %v4601_v23  ;;  %v4602_v44 = vrot.slane %v2956_v36, 4  ;;  %v357_v54 = vmul.f32 %v2531_v1, %v3053_v48  ;;  %v3069_v49 = vmul.f32 %v2533_v2, %v3053_v48 }
  0x6f   : > { %v955_v20 = vadd.f32 %v923_v38, %v890_v19  ;;  %v428_v14 = vmul.f32 %v2533_v2, %v3058_v45  ;;  %v3075_v43 = vmul.f32 %v2540_v3, %v3053_v48  ;;  %v670_v12 = vmul.f32 %v2540_v3, %v3058_v45 }
  0x70   : > { %v1916_v50 = vsel %vm749_vm1, %v1914_v31, %v4602_v44  ;;  %v1727_v36 = vadd.f32 %v1635_v25, %v1486_v30  ;;  %v534_v41 = vrot.slane %v3069_v49, 2  ;;  %v3082_v28 = vmul.f32 %v2544_v5, %v2558_v15  ;;  %v264_v44 = vld [vmem:[%s2538_s11 + $0x148] sm:$0xf] }
  0x71   : > { %v977_v38 = vmul.f32 %v2544_v5, %v2560_v16  ;;  %v1196_v47 = vadd.f32 %v1128_v13, %v955_v20  ;;  %v536_v39 = vrot.slane %v428_v14, 2  ;;  %v4495_v55 = vrot.slane %v3075_v43, 4  ;;  %v263_v13 = vld [vmem:[%s2538_s11 + $0x140] sm:$0xff] }
  0x72   : > { %v778_v35 = vrot.slane %v670_v12, 4  ;;  %v1968_v0 = vadd.f32 %v1876_v22, %v1727_v36  ;;  %v4494_v21 = vrot.slane %v3082_v28, 2  ;;  %v3090_v25 = vmul.f32 %v2546_v6, %v2558_v15 }
  0x73   : > { %v1084_v27 = vrot.slane %v977_v38, 2  ;;  %v1437_v9 = vadd.f32 %v1369_v33, %v1196_v47  ;;  %v537_v26 = vsel %vm507_vm0, %v534_v41, %v536_v39  ;;  %v1218_v22 = vmul.f32 %v2546_v6, %v2560_v16 }
  0x74   : > { %v779_v8 = vsel %vm749_vm1, %v4495_v55, %v778_v35  ;;  %2262 = vmatpush.xpose.msk.msra.mxu0 %vm1990_vm2, %v1968_v0  ;;  %2304 = vmatpush.xpose.msk.msra.mxu2 %vm1990_vm2, %v1968_v0  ;;  %v631_v46 = vadd.f32 %v537_v26, %v357_v54  ;;  %v4493_v37 = vrot.slane %v3090_v25, 4  ;;  %v1453_v33 = vmul.f32 %v2551_v10, %v2562_v17 }
  0x75   : > { %v1085_v53 = vsel %vm507_vm0, %v4494_v21, %v1084_v27  ;;  %v1502_v31 = vadd.f32 %v1470_v34, %v1437_v9  ;;  %v1325_v19 = vrot.slane %v1218_v22, 4  ;;  %v3111_v23 = vmul.f32 %v2553_v11, %v2562_v17  ;;  %v238_v21 = vld [vmem:[%s2538_s11 + $0x78] sm:$0xff] }
  0x76   : > { %v1524_v30 = vmul.f32 %v2553_v11, %v2564_v18  ;;  %v873_v54 = vadd.f32 %v779_v8, %v631_v46  ;;  %v3118_v20 = vmul.f32 %v2601_v32, %v2562_v17  ;;  %v1765_v14 = vmul.f32 %v2601_v32, %v2564_v18 }
  0x77   : > { %v3122_v12 = vmax.f32 %v263_v13, 0.0  ;;  %v1743_v34 = vadd.f32 %v1675_v42, %v1502_v31  ;;  %v1326_v36 = vsel %vm749_vm1, %v4493_v37, %v1325_v19  ;;  %v4492_v38 = vrot.slane %v3111_v23, 2 }
  0x78   : > { %v1631_v47 = vrot.slane %v1524_v30, 2  ;;  %v938_v39 = vadd.f32 %v906_v56, %v873_v54  ;;  %v4491_v35 = vrot.slane %v3118_v20, 4  ;;  %v1872_v0 = vrot.slane %v1765_v14, 4 }
  0x79   : > { %v3129_v27 = vmax.f32 %v264_v44, 0.0  ;;  %v1984_v9 = vadd.f32 %v1916_v50, %v1743_v34  ;;  %v373_v42 = vmul.f32 %v2531_v1, %v3122_v12  ;;  %v3138_v8 = vmul.f32 %v2533_v2, %v3122_v12 }
  0x7a   : > { %v1632_v26 = vsel %vm507_vm0, %v4492_v38, %v1631_v47  ;;  %v1179_v22 = vadd.f32 %v1085_v53, %v938_v39  ;;  %v1873_v56 = vsel %vm749_vm1, %v4491_v35, %v1872_v0  ;;  %v3147_v50 = vmul.f32 %v2540_v3, %v3122_v12 }
  0x7b   : > { %v452_v13 = vmul.f32 %v2533_v2, %v3129_v27  ;;  %2280 = vmatpush.xpose.msk.msra.mxu1 %vm1990_vm2, %v1984_v9  ;;  %2320 = vmatpush.xpose.msk.msra.mxu3 %vm1990_vm2, %v1984_v9  ;;  %v4501_v46 = vrot.slane %v3138_v8, 2  ;;  %v694_v53 = vmul.f32 %v2540_v3, %v3129_v27  ;;  %v922_v31 = vmul.f32 %v2542_v4, %v2640_v58 }
  0x7c   : > { %v3158_v19 = vmul.f32 %v2544_v5, %v2640_v58  ;;  %v1420_v30 = vadd.f32 %v1326_v36, %v1179_v22  ;;  %v4497_v54 = vrot.slane %v3147_v50, 4  ;;  %v1001_v14 = vmul.f32 %v2544_v5, %v2643_v61 }
  0x7d   : > { %v576_v44 = vrot.slane %v452_v13, 2  ;;  %v818_v34 = vrot.slane %v694_v53, 4  ;;  %v3166_v39 = vmul.f32 %v2546_v6, %v2640_v58  ;;  %v1242_v0 = vmul.f32 %v2546_v6, %v2643_v61 }
  0x7e   : > { %v4496_v47 = vrot.slane %v3158_v19, 2  ;;  %v1485_v9 = vadd.f32 %v1453_v33, %v1420_v30  ;;  %v1124_v22 = vrot.slane %v1001_v14, 2  ;;  %v1469_v13 = vmul.f32 %v2551_v10, %v2645_v62 }
  0x7f   : > { %v577_v36 = vsel %vm507_vm0, %v4501_v46, %v576_v44  ;;  %v819_v35 = vsel %vm749_vm1, %v4497_v54, %v818_v34  ;;  %v4500_v38 = vrot.slane %v3166_v39, 4  ;;  %v1365_v37 = vrot.slane %v1242_v0, 4  ;;  %v262_v0 = vld [vmem:[%s2538_s11 + $0x138] sm:$0xff] }
  0x80   : > { %v647_v53 = vadd.f32 %v577_v36, %v373_v42  ;;  %v1726_v55 = vadd.f32 %v1632_v26, %v1485_v9  ;;  %v1125_v33 = vsel %vm507_vm0, %v4496_v47, %v1124_v22  ;;  %v3185_v30 = vmul.f32 %v2553_v11, %v2645_v62 }
  0x81   : > { %v1548_v42 = vmul.f32 %v2553_v11, %v2650_v7  ;;  %v1366_v14 = vsel %vm749_vm1, %v4500_v38, %v1365_v37  ;;  %v3194_v34 = vmul.f32 %v2601_v32, %v2645_v62  ;;  %v1789_v26 = vmul.f32 %v2601_v32, %v2650_v7 }
  0x82   : > { %v889_v44 = vadd.f32 %v819_v35, %v647_v53  ;;  %v1967_v9 = vadd.f32 %v1873_v56, %v1726_v55  ;;  %v4498_v36 = vrot.slane %v3185_v30, 2  ;;  %v3200_v47 = vmax.f32 %v238_v21, 0.0 }
  0x83   : > { %v1671_v22 = vrot.slane %v1548_v42, 2  ;;  %v4499_v35 = vrot.slane %v3194_v34, 4  ;;  %v1912_v53 = vrot.slane %v1789_v26, 4  ;;  %v905_v37 = vmul.f32 %v2542_v4, %v2713_v52 }
  0x84   : > { %4603 = vst [vmem:[#allocation23_spill] sm:$0xff] %v3200_v47  ;;  %v954_v54 = vadd.f32 %v922_v31, %v889_v44  ;;  %2263 = vmatpush.xpose.msk.msra.mxu0 %vm1990_vm2, %v1967_v9  ;;  %2305 = vmatpush.xpose.msk.msra.mxu2 %vm1990_vm2, %v1967_v9  ;;  %v356_v7 = vmul.f32 %v2531_v1, %v3200_v47  ;;  %v3214_v21 = vmax.f32 %v262_v0, 0.0  ;;  %v4606_v49 = vrot.slane %v3090_v25, 4 }
  0x85   : > { %v1672_v62 = vsel %vm507_vm0, %v4498_v36, %v1671_v22  ;;  %v426_v55 = vmul.f32 %v2533_v2, %v3200_v47  ;;  %v1913_v31 = vsel %vm749_vm1, %v4499_v35, %v1912_v53  ;;  %v668_v42 = vmul.f32 %v2540_v3, %v3200_v47 }
  0x86   : > { %v1195_v56 = vadd.f32 %v1125_v33, %v954_v54  ;;  %v975_v44 = vmul.f32 %v2544_v5, %v2713_v52  ;;  %v1216_v9 = vmul.f32 %v2546_v6, %v2713_v52  ;;  %v1452_v22 = vmul.f32 %v2551_v10, %v2716_v63 }
  0x87   : > { %v533_v26 = vrot.slane %v426_v55, 2  ;;  %v1522_v54 = vmul.f32 %v2553_v11, %v2716_v63  ;;  %v775_v0 = vrot.slane %v668_v42, 4  ;;  %v1763_v53 = vmul.f32 %v2601_v32, %v2716_v63 }
  0x88   : > { %v1436_v33 = vadd.f32 %v1366_v14, %v1195_v56  ;;  %v1081_v36 = vrot.slane %v975_v44, 2  ;;  %v1322_v55 = vrot.slane %v1216_v9, 4  ;;  %v372_v46 = vmul.f32 %v2531_v1, %v3214_v21 }
  0x89   : > { %v535_v35 = vsel %vm507_vm0, %v533_v26, %v534_v41  ;;  %v1628_v38 = vrot.slane %v1522_v54, 2  ;;  %v4604_v52 = vrot.slane %v3075_v43, 4  ;;  %v4605_v56 = vrot.slane %v3082_v28, 2 }
  0x8a   : > { %v1501_v18 = vadd.f32 %v1469_v13, %v1436_v33  ;;  %v630_v17 = vadd.f32 %v535_v35, %v356_v7  ;;  %v1324_v41 = vsel %vm749_vm1, %v1322_v55, %v4606_v49  ;;  %v4607_v44 = vrot.slane %v3111_v23, 2 }
  0x8b   : > { %v777_v14 = vsel %vm749_vm1, %v775_v0, %v4604_v52  ;;  %v1083_v42 = vsel %vm507_vm0, %v1081_v36, %v4605_v56  ;;  %v1869_v9 = vrot.slane %v1763_v53, 4  ;;  %v450_v13 = vmul.f32 %v2533_v2, %v3214_v21  ;;  %v237_v56 = vld [vmem:[%s2538_s11 + $0x70] sm:$0xf] }
  0x8c   : > { %v1630_v26 = vsel %vm507_vm0, %v1628_v38, %v4607_v44  ;;  %v1742_v35 = vadd.f32 %v1672_v62, %v1501_v18  ;;  %v872_v43 = vadd.f32 %v777_v14, %v630_v17  ;;  %v692_v52 = vmul.f32 %v2540_v3, %v3214_v21  ;;  %v236_v18 = vld [vmem:[%s2538_s11 + $0x68] sm:$0xff] }
  0x8d   : > { %v921_v28 = vmul.f32 %v2542_v4, %v2734_v59  ;;  %v4608_v25 = vrot.slane %v3118_v20, 4  ;;  %v573_v23 = vrot.slane %v450_v13, 2  ;;  %v999_v38 = vmul.f32 %v2544_v5, %v2734_v59 }
  0x8e   : > { %v1240_v7 = vmul.f32 %v2546_v6, %v2734_v59  ;;  %v1983_v17 = vadd.f32 %v1913_v31, %v1742_v35  ;;  %v937_v62 = vadd.f32 %v905_v37, %v872_v43  ;;  %v815_v54 = vrot.slane %v692_v52, 4 }
  0x8f   : > { %v1871_v36 = vsel %vm749_vm1, %v1869_v9, %v4608_v25  ;;  %v1468_v33 = vmul.f32 %v2551_v10, %v2762_v24  ;;  %v4609_v0 = vrot.slane %v3138_v8, 2  ;;  %v1121_v53 = vrot.slane %v999_v38, 2 }
  0x90   : > { %v1362_v55 = vrot.slane %v1240_v7, 4  ;;  %v1546_v14 = vmul.f32 %v2553_v11, %v2762_v24  ;;  %2281 = vmatpush.xpose.msk.msra.mxu1 %vm1990_vm2, %v1983_v17  ;;  %2321 = vmatpush.xpose.msk.msra.mxu3 %vm1990_vm2, %v1983_v17  ;;  %v1178_v31 = vadd.f32 %v1083_v42, %v937_v62  ;;  %v4610_v49 = vrot.slane %v3147_v50, 4 }
  0x91   : > { %v575_v20 = vsel %vm507_vm0, %v573_v23, %v4609_v0  ;;  %v3275_v9 = vmax.f32 %v236_v18, 0.0  ;;  %v4611_v8 = vrot.slane %v3158_v19, 2  ;;  %v4612_v35 = vrot.slane %v3166_v39, 4 }
  0x92   : > { %v646_v37 = vadd.f32 %v575_v20, %v372_v46  ;;  %v817_v44 = vsel %vm749_vm1, %v815_v54, %v4610_v49  ;;  %v1668_v52 = vrot.slane %v1546_v14, 2  ;;  %v1787_v25 = vmul.f32 %v2601_v32, %v2762_v24 }
  0x93   : > { %v1123_v13 = vsel %vm507_vm0, %v1121_v53, %v4611_v8  ;;  %v1364_v43 = vsel %vm749_vm1, %v1362_v55, %v4612_v35  ;;  %v1419_v42 = vadd.f32 %v1324_v41, %v1178_v31  ;;  %v3285_v23 = vmax.f32 %v237_v56, 0.0 }
  0x94   : > { %v888_v46 = vadd.f32 %v817_v44, %v646_v37  ;;  %v355_v50 = vmul.f32 %v2531_v1, %v3275_v9  ;;  %v4613_v38 = vrot.slane %v3185_v30, 2  ;;  %v1909_v7 = vrot.slane %v1787_v25, 4 }
  0x95   : > { %v3294_v39 = vmul.f32 %v2533_v2, %v3275_v9  ;;  %v3298_v18 = vmul.f32 %v2540_v3, %v3275_v9  ;;  %v1484_v32 = vadd.f32 %v1452_v22, %v1419_v42  ;;  %v425_v41 = vmul.f32 %v2533_v2, %v3285_v23 }
  0x96   : > { %v1670_v19 = vsel %vm507_vm0, %v1668_v52, %v4613_v38  ;;  %v953_v24 = vadd.f32 %v921_v28, %v888_v46  ;;  %v667_v17 = vmul.f32 %v2540_v3, %v3285_v23  ;;  %v4614_v30 = vrot.slane %v3194_v34, 4  ;;  %v260_v46 = vld [vmem:[%s2538_s11 + $0x128] sm:$0xff] }
  0x97   : > { %v4513_v54 = vrot.slane %v3294_v39, 2  ;;  %v4512_v0 = vrot.slane %v3298_v18, 4  ;;  %v904_v20 = vmul.f32 %v2542_v4, %v2797_v57  ;;  %v1725_v53 = vadd.f32 %v1630_v26, %v1484_v32 }
  0x98   : > { %v1911_v62 = vsel %vm749_vm1, %v1909_v7, %v4614_v30  ;;  %v1194_v22 = vadd.f32 %v1123_v13, %v953_v24  ;;  %v531_v28 = vrot.slane %v425_v41, 2  ;;  %v773_v55 = vrot.slane %v667_v17, 4  ;;  %v4615_v7 = vld [vmem:[#allocation13_spill] sm:$0xff]  ;;  %v261_v41 = vld [vmem:[%s2538_s11 + $0x130] sm:$0xf] }
  0x99   : > { %v3313_v14 = vmul.f32 %v2544_v5, %v2797_v57  ;;  %v974_v34 = vmul.f32 %v2544_v5, %v2807_v40  ;;  %v3319_v56 = vmul.f32 %v2546_v6, %v2797_v57  ;;  %v1215_v31 = vmul.f32 %v2546_v6, %v2807_v40 }
  0x9a   : > { %v1966_v37 = vadd.f32 %v1871_v36, %v1725_v53  ;;  %v1435_v26 = vadd.f32 %v1364_v43, %v1194_v22  ;;  %v532_v49 = vsel %vm507_vm0, %v4513_v54, %v531_v28  ;;  %v774_v44 = vsel %vm749_vm1, %v4512_v0, %v773_v55  ;;  %v4621_v0 = vld [vmem:[#allocation18_spill] sm:$0xff] }
  0x9b   : > { %v629_v8 = vadd.f32 %v532_v49, %v355_v50  ;;  %v4511_v13 = vrot.slane %v3313_v14, 2  ;;  %v1079_v35 = vrot.slane %v974_v34, 2  ;;  %v4510_v52 = vrot.slane %v3319_v56, 4 }
  0x9c   : > { %2264 = vmatpush.xpose.msk.msra.mxu0 %vm1990_vm2, %v1966_v37  ;;  %2306 = vmatpush.xpose.msk.msra.mxu2 %vm1990_vm2, %v1966_v37  ;;  %v1500_v36 = vadd.f32 %v1468_v33, %v1435_v26  ;;  %v1320_v43 = vrot.slane %v1215_v31, 4  ;;  %v1451_v25 = vmul.f32 %v2551_v10, %v2809_v51  ;;  %v3337_v42 = vmul.f32 %v2553_v11, %v2809_v51  ;;  %v3348_v33 = vld [vmem:[%s4442_s1 + $0x8] ss:$0 sm:$0xff]  ;;  %v235_v37 = vld [vmem:[%s2538_s11 + $0x60] sm:$0xff] }
  0x9d   : > { %v871_v50 = vadd.f32 %v774_v44, %v629_v8  ;;  %v1080_v38 = vsel %vm507_vm0, %v4511_v13, %v1079_v35  ;;  %v1521_v32 = vmul.f32 %v2553_v11, %v4615_v7  ;;  %v3352_v24 = vmul.f32 %v3348_v33, %v2809_v51 }
  0x9e   : > { %v1741_v17 = vadd.f32 %v1670_v19, %v1500_v36  ;;  %v1321_v30 = vsel %vm749_vm1, %v4510_v52, %v1320_v43  ;;  %v4509_v53 = vrot.slane %v3337_v42, 2  ;;  %v1762_v22 = vmul.f32 %v3348_v33, %v4615_v7  ;;  %v4618_v19 = vld [vmem:[#allocation16_spill] sm:$0xff] }
  0x9f   : > { %v936_v28 = vadd.f32 %v904_v20, %v871_v50  ;;  %v1626_v55 = vrot.slane %v1521_v32, 2  ;;  %v4508_v34 = vrot.slane %v3352_v24, 4  ;;  %v3362_v31 = vmax.f32 %v260_v46, 0.0 }
  0xa0   : > { %v1982_v26 = vadd.f32 %v1911_v62, %v1741_v17  ;;  %v1867_v49 = vrot.slane %v1762_v22, 4  ;;  %v3365_v44 = vmax.f32 %v261_v41, 0.0  ;;  %v920_v8 = vmul.f32 %v2542_v4, %v4618_v19 }
  0xa1   : > { %4616 = vst [vmem:[#allocation24_spill] sm:$0xff] %v3362_v31  ;;  %v1177_v35 = vadd.f32 %v1080_v38, %v936_v28  ;;  %v1627_v36 = vsel %vm507_vm0, %v4509_v53, %v1626_v55  ;;  %v371_v20 = vmul.f32 %v2531_v1, %v3362_v31  ;;  %v3376_v43 = vmul.f32 %v2533_v2, %v3362_v31 }
  0xa2   : > { %4617 = vst [vmem:[#allocation25_spill] sm:$0xff] %v3365_v44  ;;  %2282 = vmatpush.xpose.msk.msra.mxu1 %vm1990_vm2, %v1982_v26  ;;  %2322 = vmatpush.xpose.msk.msra.mxu3 %vm1990_vm2, %v1982_v26  ;;  %v1868_v62 = vsel %vm749_vm1, %v4508_v34, %v1867_v49  ;;  %v449_v46 = vmul.f32 %v2533_v2, %v3365_v44  ;;  %v3389_v38 = vmax.f32 %v235_v37, 0.0  ;;  %v4620_v26 = vld [vmem:[#allocation17_spill] sm:$0xff] }
  0xa3   : > { %v3387_v50 = vmul.f32 %v2540_v3, %v3362_v31  ;;  %v1418_v32 = vadd.f32 %v1321_v30, %v1177_v35  ;;  %v4517_v41 = vrot.slane %v3376_v43, 2  ;;  %v691_v17 = vmul.f32 %v2540_v3, %v3365_v44 }
  0xa4   : > { %4619 = vst [vmem:[#allocation26_spill] sm:$0xff] %v3389_v38  ;;  %v3396_v22 = vmul.f32 %v2544_v5, %v4618_v19  ;;  %v571_v28 = vrot.slane %v449_v46, 2  ;;  %v998_v49 = vmul.f32 %v2544_v5, %v4620_v26  ;;  %v3403_v37 = vmul.f32 %v2546_v6, %v4618_v19  ;;  %v259_v19 = vld [vmem:[%s2538_s11 + $0x120] sm:$0xff] }
  0xa5   : > { %v1483_v30 = vadd.f32 %v1451_v25, %v1418_v32  ;;  %v813_v35 = vrot.slane %v691_v17, 4  ;;  %v1239_v53 = vmul.f32 %v2546_v6, %v4620_v26  ;;  %v1467_v54 = vmul.f32 %v2551_v10, %v4621_v0  ;;  %v4625_v26 = vld [vmem:[#allocation21_spill] sm:$0xff] }
  0xa6   : > { %v4518_v34 = vrot.slane %v3396_v22, 2  ;;  %v572_v46 = vsel %vm507_vm0, %v4517_v41, %v571_v28  ;;  %v1119_v52 = vrot.slane %v998_v49, 2  ;;  %v4519_v13 = vrot.slane %v3403_v37, 4  ;;  %v4623_v49 = vld [vmem:[#allocation19_spill] sm:$0xff] }
  0xa7   : > { %v1724_v55 = vadd.f32 %v1627_v36, %v1483_v30  ;;  %v645_v7 = vadd.f32 %v572_v46, %v371_v20  ;;  %v4622_v25 = vrot.slane %v3387_v50, 4  ;;  %v1360_v17 = vrot.slane %v1239_v53, 4 }
  0xa8   : > { %v1120_v51 = vsel %vm507_vm0, %v4518_v34, %v1119_v52  ;;  %v3422_v28 = vmul.f32 %v2553_v11, %v4621_v0  ;;  %v1545_v41 = vmul.f32 %v2553_v11, %v4623_v49  ;;  %v3428_v36 = vmul.f32 %v3348_v33, %v4621_v0 }
  0xa9   : > { %v814_v32 = vsel %vm749_vm1, %v4622_v25, %v813_v35  ;;  %v1965_v20 = vadd.f32 %v1868_v62, %v1724_v55  ;;  %v1361_v53 = vsel %vm749_vm1, %v4519_v13, %v1360_v17  ;;  %v1786_v52 = vmul.f32 %v3348_v33, %v4623_v49 }
  0xaa   : > { %v887_v30 = vadd.f32 %v814_v32, %v645_v7  ;;  %v4525_v35 = vrot.slane %v3422_v28, 2  ;;  %v1666_v46 = vrot.slane %v1545_v41, 2  ;;  %v4531_v25 = vrot.slane %v3428_v36, 4  ;;  %v4624_v32 = vld [vmem:[#allocation20_spill] sm:$0xff] }
  0xab   : > { %v354_v34 = vmul.f32 %v2531_v1, %v3389_v38  ;;  %2265 = vmatpush.xpose.msk.msra.mxu0 %vm1990_vm2, %v1965_v20  ;;  %2307 = vmatpush.xpose.msk.msra.mxu2 %vm1990_vm2, %v1965_v20  ;;  %v1907_v7 = vrot.slane %v1786_v52, 4  ;;  %v423_v62 = vmul.f32 %v2533_v2, %v3389_v38  ;;  %v665_v55 = vmul.f32 %v2540_v3, %v3389_v38 }
  0xac   : > { %v952_v0 = vadd.f32 %v920_v8, %v887_v30  ;;  %v1667_v41 = vsel %vm507_vm0, %v4525_v35, %v1666_v46  ;;  %v903_v17 = vmul.f32 %v2542_v4, %v4624_v32  ;;  %v972_v49 = vmul.f32 %v2544_v5, %v4624_v32 }
  0xad   : > { %v1213_v8 = vmul.f32 %v2546_v6, %v4624_v32  ;;  %v1908_v30 = vsel %vm749_vm1, %v4531_v25, %v1907_v7  ;;  %v528_v52 = vrot.slane %v423_v62, 2  ;;  %v770_v13 = vrot.slane %v665_v55, 4 }
  0xae   : > { %v1193_v20 = vadd.f32 %v1120_v51, %v952_v0  ;;  %v1076_v63 = vrot.slane %v972_v49, 2  ;;  %v1450_v46 = vmul.f32 %v2551_v10, %v4625_v26  ;;  %v1519_v35 = vmul.f32 %v2553_v11, %v4625_v26 }
  0xaf   : > { %v1317_v38 = vrot.slane %v1213_v8, 4  ;;  %v4626_v31 = vrot.slane %v3294_v39, 2  ;;  %v4627_v0 = vrot.slane %v3298_v18, 4  ;;  %v1760_v62 = vmul.f32 %v3348_v33, %v4625_v26  ;;  %v4643_v26 = vld [vmem:[#allocation11_spill] sm:$0xff] }
  0xb0   : > { %v1434_v44 = vadd.f32 %v1361_v53, %v1193_v20  ;;  %v4628_v49 = vrot.slane %v3313_v14, 2  ;;  %v4629_v25 = vrot.slane %v3319_v56, 4  ;;  %v1623_v20 = vrot.slane %v1519_v35, 2 }
  0xb1   : > { %v530_v51 = vsel %vm507_vm0, %v528_v52, %v4626_v31  ;;  %v772_v7 = vsel %vm749_vm1, %v770_v13, %v4627_v0  ;;  %v1864_v31 = vrot.slane %v1760_v62, 4  ;;  %v3476_v52 = vmax.f32 %v259_v19, 0.0 }
  0xb2   : > { %v628_v55 = vadd.f32 %v530_v51, %v354_v34  ;;  %v1078_v8 = vsel %vm507_vm0, %v1076_v63, %v4628_v49  ;;  %v1319_v53 = vsel %vm749_vm1, %v1317_v38, %v4629_v25  ;;  %v1499_v39 = vadd.f32 %v1467_v54, %v1434_v44  ;;  %v234_v49 = vld [vmem:[%s2538_s11 + $0x58] sm:$0xf] }
  0xb3   : > { %v919_v18 = vmul.f32 %v2542_v4, %v3006_v29  ;;  %v4630_v34 = vrot.slane %v3337_v42, 2  ;;  %v996_v63 = vmul.f32 %v2544_v5, %v3006_v29  ;;  %v1237_v56 = vmul.f32 %v2546_v6, %v3006_v29 }
  0xb4   : > { %v870_v13 = vadd.f32 %v772_v7, %v628_v55  ;;  %v1740_v54 = vadd.f32 %v1667_v41, %v1499_v39  ;;  %v4631_v44 = vrot.slane %v3352_v24, 4  ;;  %v370_v38 = vmul.f32 %v2531_v1, %v3476_v52  ;;  %v233_v7 = vld [vmem:[%s2538_s11 + $0x50] sm:$0xff] }
  0xb5   : > { %v1625_v14 = vsel %vm507_vm0, %v1623_v20, %v4630_v34  ;;  %v447_v42 = vmul.f32 %v2533_v2, %v3476_v52  ;;  %v689_v25 = vmul.f32 %v2540_v3, %v3476_v52  ;;  %v1116_v51 = vrot.slane %v996_v63, 2 }
  0xb6   : > { %v1866_v19 = vsel %vm749_vm1, %v1864_v31, %v4631_v44  ;;  %v935_v35 = vadd.f32 %v903_v17, %v870_v13  ;;  %v1357_v0 = vrot.slane %v1237_v56, 4  ;;  %v1981_v62 = vadd.f32 %v1908_v30, %v1740_v54 }
  0xb7   : > { %v568_v55 = vrot.slane %v447_v42, 2  ;;  %v1466_v24 = vmul.f32 %v2551_v10, %v3017_v60  ;;  %v1543_v41 = vmul.f32 %v2553_v11, %v3017_v60  ;;  %v810_v39 = vrot.slane %v689_v25, 4 }
  0xb8   : > { %v1176_v20 = vadd.f32 %v1078_v8, %v935_v35  ;;  %v4632_v31 = vrot.slane %v3396_v22, 2  ;;  %v4633_v13 = vrot.slane %v3403_v37, 4  ;;  %2283 = vmatpush.xpose.msk.msra.mxu1 %vm1990_vm2, %v1981_v62  ;;  %2323 = vmatpush.xpose.msk.msra.mxu3 %vm1990_vm2, %v1981_v62  ;;  %v4634_v30 = vrot.slane %v3376_v43, 2 }
  0xb9   : > { %v1663_v56 = vrot.slane %v1543_v41, 2  ;;  %v1784_v8 = vmul.f32 %v3348_v33, %v3017_v60  ;;  %v3515_v54 = vmax.f32 %v233_v7, 0.0  ;;  %v4635_v37 = vrot.slane %v3387_v50, 4 }
  0xba   : > { %v1118_v17 = vsel %vm507_vm0, %v1116_v51, %v4632_v31  ;;  %v1359_v34 = vsel %vm749_vm1, %v1357_v0, %v4633_v13  ;;  %v570_v63 = vsel %vm507_vm0, %v568_v55, %v4634_v30  ;;  %v1417_v22 = vadd.f32 %v1319_v53, %v1176_v20 }
  0xbb   : > { %v644_v44 = vadd.f32 %v570_v63, %v370_v38  ;;  %v812_v42 = vsel %vm749_vm1, %v810_v39, %v4635_v37  ;;  %v3520_v35 = vmax.f32 %v234_v49, 0.0  ;;  %v4636_v25 = vrot.slane %v3422_v28, 2 }
  0xbc   : > { %v1904_v51 = vrot.slane %v1784_v8, 4  ;;  %v353_v0 = vmul.f32 %v2531_v1, %v3515_v54  ;;  %v3529_v60 = vmul.f32 %v2533_v2, %v3515_v54  ;;  %v1482_v53 = vadd.f32 %v1450_v46, %v1417_v22 }
  0xbd   : > { %v1665_v43 = vsel %vm507_vm0, %v1663_v56, %v4636_v25  ;;  %v886_v38 = vadd.f32 %v812_v42, %v644_v44  ;;  %v422_v50 = vmul.f32 %v2533_v2, %v3520_v35  ;;  %v3535_v7 = vmul.f32 %v2540_v3, %v3515_v54 }
  0xbe   : > { %v4637_v28 = vrot.slane %v3428_v36, 4  ;;  %v4540_v55 = vrot.slane %v3529_v60, 2  ;;  %v664_v41 = vmul.f32 %v2540_v3, %v3520_v35  ;;  %v902_v46 = vmul.f32 %v2542_v4, %v3053_v48 }
  0xbf   : > { %v1723_v49 = vadd.f32 %v1625_v14, %v1482_v53  ;;  %v951_v20 = vadd.f32 %v919_v18, %v886_v38  ;;  %v526_v39 = vrot.slane %v422_v50, 2  ;;  %v4535_v31 = vrot.slane %v3535_v7, 4 }
  0xc0   : > { %v1906_v62 = vsel %vm749_vm1, %v1904_v51, %v4637_v28  ;;  %v768_v13 = vrot.slane %v664_v41, 4  ;;  %v3548_v30 = vmul.f32 %v2544_v5, %v3053_v48  ;;  %v971_v36 = vmul.f32 %v2544_v5, %v3058_v45 }
  0xc1   : > { %v3554_v63 = vmul.f32 %v2546_v6, %v3053_v48  ;;  %v1964_v56 = vadd.f32 %v1866_v19, %v1723_v49  ;;  %v1192_v8 = vadd.f32 %v1118_v17, %v951_v20  ;;  %v527_v18 = vsel %vm507_vm0, %v4540_v55, %v526_v39 }
  0xc2   : > { %v1212_v14 = vmul.f32 %v2546_v6, %v3058_v45  ;;  %v627_v22 = vadd.f32 %v527_v18, %v353_v0  ;;  %v769_v44 = vsel %vm749_vm1, %v4535_v31, %v768_v13  ;;  %v1072_v37 = vrot.slane %v3548_v30, 2 }
  0xc3   : > { %v1074_v42 = vrot.slane %v971_v36, 2  ;;  %2266 = vmatpush.xpose.msk.msra.mxu0 %vm1990_vm2, %v1964_v56  ;;  %2308 = vmatpush.xpose.msk.msra.mxu2 %vm1990_vm2, %v1964_v56  ;;  %v1433_v19 = vadd.f32 %v1359_v34, %v1192_v8  ;;  %v4541_v17 = vrot.slane %v3554_v63, 4  ;;  %v1449_v51 = vmul.f32 %v2551_v10, %v2558_v15  ;;  %v4638_v36 = vld [vmem:[#allocation7_spill] sm:$0xff] }
  0xc4   : > { %v1315_v25 = vrot.slane %v1212_v14, 4  ;;  %v869_v53 = vadd.f32 %v769_v44, %v627_v22  ;;  %v3575_v38 = vmul.f32 %v2553_v11, %v2558_v15  ;;  %v1518_v50 = vmul.f32 %v2553_v11, %v2560_v16 }
  0xc5   : > { %v1075_v0 = vsel %vm507_vm0, %v1072_v37, %v1074_v42  ;;  %v1498_v28 = vadd.f32 %v1466_v24, %v1433_v19  ;;  %v3584_v41 = vmul.f32 %v3348_v33, %v2558_v15  ;;  %v1759_v49 = vmul.f32 %v3348_v33, %v2560_v16 }
  0xc6   : > { %v1316_v34 = vsel %vm749_vm1, %v4541_v17, %v1315_v25  ;;  %v934_v20 = vadd.f32 %v902_v46, %v869_v53  ;;  %v4533_v39 = vrot.slane %v3575_v38, 2  ;;  %v1621_v13 = vrot.slane %v1518_v50, 2  ;;  %v4639_v46 = vld [vmem:[#allocation8_spill] sm:$0xff] }
  0xc7   : > { %v369_v56 = vmul.f32 %v2531_v1, %v4638_v36  ;;  %v1739_v8 = vadd.f32 %v1665_v43, %v1498_v28  ;;  %v4532_v24 = vrot.slane %v3584_v41, 4  ;;  %v1862_v18 = vrot.slane %v1759_v49, 4 }
  0xc8   : > { %v3594_v14 = vmul.f32 %v2533_v2, %v4638_v36  ;;  %v1175_v15 = vadd.f32 %v1075_v0, %v934_v20  ;;  %v1622_v16 = vsel %vm507_vm0, %v4533_v39, %v1621_v13  ;;  %v446_v22 = vmul.f32 %v2533_v2, %v4639_v46 }
  0xc9   : > { %v3603_v44 = vmul.f32 %v2540_v3, %v4638_v36  ;;  %v1980_v43 = vadd.f32 %v1906_v62, %v1739_v8  ;;  %v1863_v42 = vsel %vm749_vm1, %v4532_v24, %v1862_v18  ;;  %v688_v25 = vmul.f32 %v2540_v3, %v4639_v46 }
  0xca   : > { %v4534_v19 = vrot.slane %v3594_v14, 2  ;;  %v1416_v53 = vadd.f32 %v1316_v34, %v1175_v15  ;;  %v566_v0 = vrot.slane %v446_v22, 2  ;;  %v918_v28 = vmul.f32 %v2542_v4, %v3122_v12 }
  0xcb   : > { %v4538_v50 = vrot.slane %v3603_v44, 4  ;;  %2284 = vmatpush.xpose.msk.msra.mxu1 %vm1990_vm2, %v1980_v43  ;;  %2324 = vmatpush.xpose.msk.msra.mxu3 %vm1990_vm2, %v1980_v43  ;;  %v808_v62 = vrot.slane %v688_v25, 4  ;;  %v3618_v49 = vmul.f32 %v2544_v5, %v3122_v12  ;;  %v995_v20 = vmul.f32 %v2544_v5, %v3129_v27 }
  0xcc   : > { %v3624_v34 = vmul.f32 %v2546_v6, %v3122_v12  ;;  %v1481_v13 = vadd.f32 %v1449_v51, %v1416_v53  ;;  %v567_v8 = vsel %vm507_vm0, %v4534_v19, %v566_v0  ;;  %v1236_v18 = vmul.f32 %v2546_v6, %v3129_v27  ;;  %v232_v19 = vld [vmem:[%s2538_s11 + $0x48] sm:$0xff] }
  0xcd   : > { %v1465_v15 = vmul.f32 %v2551_v10, %v2640_v58  ;;  %v643_v22 = vadd.f32 %v567_v8, %v369_v56  ;;  %v809_v43 = vsel %vm749_vm1, %v4538_v50, %v808_v62  ;;  %v4536_v25 = vrot.slane %v3618_v49, 2  ;;  %v4640_v50 = vld [vmem:[#allocation9_spill] sm:$0xff] }
  0xce   : > { %v1114_v24 = vrot.slane %v995_v20, 2  ;;  %v1722_v39 = vadd.f32 %v1622_v16, %v1481_v13  ;;  %v4537_v51 = vrot.slane %v3624_v34, 4  ;;  %v1355_v53 = vrot.slane %v1236_v18, 4 }
  0xcf   : > { %v3640_v0 = vmul.f32 %v2553_v11, %v2640_v58  ;;  %v885_v31 = vadd.f32 %v809_v43, %v643_v22  ;;  %v1542_v62 = vmul.f32 %v2553_v11, %v2643_v61  ;;  %v3650_v20 = vmul.f32 %v3348_v33, %v2640_v58 }
  0xd0   : > { %v1115_v56 = vsel %vm507_vm0, %v4536_v25, %v1114_v24  ;;  %v1963_v16 = vadd.f32 %v1863_v42, %v1722_v39  ;;  %v1356_v13 = vsel %vm749_vm1, %v4537_v51, %v1355_v53  ;;  %v1783_v18 = vmul.f32 %v3348_v33, %v2643_v61 }
  0xd1   : > { %v4539_v8 = vrot.slane %v3640_v0, 2  ;;  %v950_v22 = vadd.f32 %v918_v28, %v885_v31  ;;  %v1661_v43 = vrot.slane %v1542_v62, 2  ;;  %v4542_v24 = vrot.slane %v3650_v20, 4 }
  0xd2   : > { %v3659_v25 = vmax.f32 %v232_v19, 0.0  ;;  %2267 = vmatpush.xpose.msk.msra.mxu0 %vm1990_vm2, %v1963_v16  ;;  %2309 = vmatpush.xpose.msk.msra.mxu2 %vm1990_vm2, %v1963_v16  ;;  %v1902_v58 = vrot.slane %v1783_v18, 4  ;;  %v901_v39 = vmul.f32 %v2542_v4, %v3200_v47  ;;  %v969_v42 = vmul.f32 %v2544_v5, %v3200_v47 }
  0xd3   : > { %v1210_v61 = vmul.f32 %v2546_v6, %v3200_v47  ;;  %v1191_v31 = vadd.f32 %v1115_v56, %v950_v22  ;;  %v1662_v19 = vsel %vm507_vm0, %v4539_v8, %v1661_v43  ;;  %v1448_v43 = vmul.f32 %v2551_v10, %v4640_v50 }
  0xd4   : > { %v352_v28 = vmul.f32 %v2531_v1, %v3659_v25  ;;  %v420_v53 = vmul.f32 %v2533_v2, %v3659_v25  ;;  %v1903_v62 = vsel %vm749_vm1, %v4542_v24, %v1902_v58  ;;  %v662_v16 = vmul.f32 %v2540_v3, %v3659_v25 }
  0xd5   : > { %v1071_v18 = vrot.slane %v969_v42, 2  ;;  %v1312_v51 = vrot.slane %v1210_v61, 4  ;;  %v1432_v56 = vadd.f32 %v1356_v13, %v1191_v31  ;;  %v1516_v8 = vmul.f32 %v2553_v11, %v4640_v50 }
  0xd6   : > { %v523_v22 = vrot.slane %v420_v53, 2  ;;  %v765_v55 = vrot.slane %v662_v16, 4  ;;  %v4641_v58 = vrot.slane %v3554_v63, 4  ;;  %v1757_v42 = vmul.f32 %v3348_v33, %v4640_v50 }
  0xd7   : > { %v1073_v17 = vsel %vm507_vm0, %v1071_v18, %v1072_v37  ;;  %v1497_v13 = vadd.f32 %v1465_v15, %v1432_v56  ;;  %v4642_v61 = vrot.slane %v3529_v60, 2  ;;  %v1618_v53 = vrot.slane %v1516_v8, 2 }
  0xd8   : > { %v1314_v24 = vsel %vm749_vm1, %v1312_v51, %v4641_v58  ;;  %v368_v16 = vmul.f32 %v2531_v1, %v4643_v26  ;;  %v4644_v30 = vrot.slane %v3535_v7, 4  ;;  %v1859_v37 = vrot.slane %v1757_v42, 4 }
  0xd9   : > { %v525_v31 = vsel %vm507_vm0, %v523_v22, %v4642_v61  ;;  %v444_v51 = vmul.f32 %v2533_v2, %v4643_v26  ;;  %v1738_v50 = vadd.f32 %v1662_v19, %v1497_v13  ;;  %v4645_v15 = vrot.slane %v3575_v38, 2  ;;  %v230_v13 = vld [vmem:[%s2538_s11 + $0x38] sm:$0xff] }
  0xda   : > { %v626_v47 = vadd.f32 %v525_v31, %v352_v28  ;;  %v767_v63 = vsel %vm749_vm1, %v765_v55, %v4644_v30  ;;  %v686_v8 = vmul.f32 %v2540_v3, %v4643_v26  ;;  %v917_v28 = vmul.f32 %v2542_v4, %v3214_v21  ;;  %v231_v30 = vld [vmem:[%s2538_s11 + $0x40] sm:$0xf] }
  0xdb   : > { %v1620_v60 = vsel %vm507_vm0, %v1618_v53, %v4645_v15  ;;  %v4646_v18 = vrot.slane %v3584_v41, 4  ;;  %v563_v56 = vrot.slane %v444_v51, 2  ;;  %v993_v19 = vmul.f32 %v2544_v5, %v3214_v21 }
  0xdc   : > { %v868_v7 = vadd.f32 %v767_v63, %v626_v47  ;;  %v1979_v22 = vadd.f32 %v1903_v62, %v1738_v50  ;;  %v805_v38 = vrot.slane %v686_v8, 4  ;;  %v1234_v58 = vmul.f32 %v2546_v6, %v3214_v21 }
  0xdd   : > { %v1861_v55 = vsel %vm749_vm1, %v1859_v37, %v4646_v18  ;;  %v1464_v42 = vmul.f32 %v2551_v10, %v2734_v59  ;;  %v4647_v47 = vrot.slane %v3594_v14, 2  ;;  %v1111_v31 = vrot.slane %v993_v19, 2 }
  0xde   : > { %v933_v61 = vadd.f32 %v901_v39, %v868_v7  ;;  %v1540_v53 = vmul.f32 %v2553_v11, %v2734_v59  ;;  %2285 = vmatpush.xpose.msk.msra.mxu1 %vm1990_vm2, %v1979_v22  ;;  %2325 = vmatpush.xpose.msk.msra.mxu3 %vm1990_vm2, %v1979_v22  ;;  %v4648_v63 = vrot.slane %v3603_v44, 4  ;;  %v1352_v51 = vrot.slane %v1234_v58, 4 }
  0xdf   : > { %v565_v41 = vsel %vm507_vm0, %v563_v56, %v4647_v47  ;;  %v1781_v14 = vmul.f32 %v3348_v33, %v2734_v59  ;;  %v4649_v50 = vrot.slane %v3618_v49, 2  ;;  %v3736_v7 = vmax.f32 %v230_v13, 0.0 }
  0xe0   : > { %v642_v62 = vadd.f32 %v565_v41, %v368_v16  ;;  %v807_v37 = vsel %vm749_vm1, %v805_v38, %v4648_v63  ;;  %v1174_v39 = vadd.f32 %v1073_v17, %v933_v61  ;;  %v1658_v8 = vrot.slane %v1540_v53, 2 }
  0xe1   : > { %v1113_v15 = vsel %vm507_vm0, %v1111_v31, %v4649_v50  ;;  %v4650_v56 = vrot.slane %v3624_v34, 4  ;;  %v1899_v44 = vrot.slane %v1781_v14, 4  ;;  %v3741_v19 = vmax.f32 %v231_v30, 0.0 }
  0xe2   : > { %v884_v18 = vadd.f32 %v807_v37, %v642_v62  ;;  %v1415_v22 = vadd.f32 %v1314_v24, %v1174_v39  ;;  %v4651_v38 = vrot.slane %v3640_v0, 2  ;;  %v351_v17 = vmul.f32 %v2531_v1, %v3736_v7 }
  0xe3   : > { %v1354_v16 = vsel %vm749_vm1, %v1352_v51, %v4650_v56  ;;  %v3750_v49 = vmul.f32 %v2533_v2, %v3736_v7  ;;  %v4652_v34 = vrot.slane %v3650_v20, 4  ;;  %v419_v61 = vmul.f32 %v2533_v2, %v3741_v19 }
  0xe4   : > { %v1660_v59 = vsel %vm507_vm0, %v1658_v8, %v4651_v38  ;;  %v949_v58 = vadd.f32 %v917_v28, %v884_v18  ;;  %v3759_v0 = vmul.f32 %v2540_v3, %v3736_v7  ;;  %v1480_v24 = vadd.f32 %v1448_v43, %v1415_v22 }
  0xe5   : > { %v1901_v13 = vsel %vm749_vm1, %v1899_v44, %v4652_v34  ;;  %v4552_v47 = vrot.slane %v3750_v49, 2  ;;  %v661_v41 = vmul.f32 %v2540_v3, %v3741_v19  ;;  %v900_v28 = vmul.f32 %v2542_v4, %v3275_v9 }
  0xe6   : > { %v1190_v20 = vadd.f32 %v1113_v15, %v949_v58  ;;  %v521_v31 = vrot.slane %v419_v61, 2  ;;  %v4550_v53 = vrot.slane %v3759_v0, 4  ;;  %v3769_v30 = vmul.f32 %v2544_v5, %v3275_v9  ;;  %v229_v15 = vld [vmem:[%s2538_s11 + $0x30] sm:$0xff] }
  0xe7   : > { %v1721_v62 = vadd.f32 %v1620_v60, %v1480_v24  ;;  %v763_v63 = vrot.slane %v661_v41, 4  ;;  %v968_v43 = vmul.f32 %v2544_v5, %v3285_v23  ;;  %v3775_v37 = vmul.f32 %v2546_v6, %v3275_v9 }
  0xe8   : > { %v1431_v51 = vadd.f32 %v1354_v16, %v1190_v20  ;;  %v522_v14 = vsel %vm507_vm0, %v4552_v47, %v521_v31  ;;  %v4549_v39 = vrot.slane %v3769_v30, 2  ;;  %v1209_v50 = vmul.f32 %v2546_v6, %v3285_v23 }
  0xe9   : > { %v1962_v60 = vadd.f32 %v1861_v55, %v1721_v62  ;;  %v625_v8 = vadd.f32 %v522_v14, %v351_v17  ;;  %v764_v18 = vsel %vm749_vm1, %v4550_v53, %v763_v63  ;;  %v1069_v56 = vrot.slane %v968_v43, 2  ;;  %v4654_v63 = vld [vmem:[#allocation14_spill] sm:$0xff] }
  0xea   : > { %v1496_v44 = vadd.f32 %v1464_v42, %v1431_v51  ;;  %v4548_v16 = vrot.slane %v3775_v37, 4  ;;  %v1310_v22 = vrot.slane %v1209_v50, 4  ;;  %v1447_v38 = vmul.f32 %v2551_v10, %v2797_v57 }
  0xeb   : > { %2268 = vmatpush.xpose.msk.msra.mxu0 %vm1990_vm2, %v1962_v60  ;;  %2310 = vmatpush.xpose.msk.msra.mxu2 %vm1990_vm2, %v1962_v60  ;;  %v867_v58 = vadd.f32 %v764_v18, %v625_v8  ;;  %v1070_v55 = vsel %vm507_vm0, %v4549_v39, %v1069_v56  ;;  %v3797_v17 = vmul.f32 %v2553_v11, %v2797_v57  ;;  %v3799_v42 = vmax.f32 %v229_v15, 0.0  ;;  %v4655_v60 = vld [vmem:[#allocation15_spill] sm:$0xff]  ;;  %v4656_v56 = vld [vmem:[#allocation24_spill] sm:$0xff] }
  0xec   : > { %v1737_v34 = vadd.f32 %v1660_v59, %v1496_v44  ;;  %v1311_v61 = vsel %vm749_vm1, %v4548_v16, %v1310_v22  ;;  %v1515_v24 = vmul.f32 %v2553_v11, %v2807_v40  ;;  %v3808_v41 = vmul.f32 %v3348_v33, %v2797_v57 }
  0xed   : > { %4653 = vst [vmem:[#allocation18_spill] sm:$0xff] %v3799_v42  ;;  %v932_v20 = vadd.f32 %v900_v28, %v867_v58  ;;  %v4547_v31 = vrot.slane %v3797_v17, 2  ;;  %v1756_v62 = vmul.f32 %v3348_v33, %v2807_v40  ;;  %v367_v59 = vmul.f32 %v2531_v1, %v4654_v63 }
  0xee   : > { %v1978_v43 = vadd.f32 %v1901_v13, %v1737_v34  ;;  %v1616_v51 = vrot.slane %v1515_v24, 2  ;;  %v4546_v14 = vrot.slane %v3808_v41, 4  ;;  %v3818_v50 = vmul.f32 %v2533_v2, %v4654_v63 }
  0xef   : > { %v1173_v15 = vadd.f32 %v1070_v55, %v932_v20  ;;  %v1857_v57 = vrot.slane %v1756_v62, 4  ;;  %v443_v28 = vmul.f32 %v2533_v2, %v4655_v60  ;;  %v3824_v8 = vmul.f32 %v2540_v3, %v4654_v63  ;;  %v4657_v62 = vld [vmem:[#allocation25_spill] sm:$0xff] }
  0xf0   : > { %2286 = vmatpush.xpose.msk.msra.mxu1 %vm1990_vm2, %v1978_v43  ;;  %2326 = vmatpush.xpose.msk.msra.mxu3 %vm1990_vm2, %v1978_v43  ;;  %v1617_v40 = vsel %vm507_vm0, %v4547_v31, %v1616_v51  ;;  %v4551_v13 = vrot.slane %v3818_v50, 2  ;;  %v685_v18 = vmul.f32 %v2540_v3, %v4655_v60  ;;  %v916_v44 = vmul.f32 %v2542_v4, %v4656_v56 }
  0xf1   : > { %v1414_v22 = vadd.f32 %v1311_v61, %v1173_v15  ;;  %v1858_v58 = vsel %vm749_vm1, %v4546_v14, %v1857_v57  ;;  %v561_v55 = vrot.slane %v443_v28, 2  ;;  %v4555_v34 = vrot.slane %v3824_v8, 4  ;;  %v4658_v28 = vld [vmem:[#allocation16_spill] sm:$0xff] }
  0xf2   : > { %v803_v24 = vrot.slane %v685_v18, 4  ;;  %v3842_v20 = vmul.f32 %v2544_v5, %v4656_v56  ;;  %v992_v43 = vmul.f32 %v2544_v5, %v4657_v62  ;;  %v3848_v51 = vmul.f32 %v2546_v6, %v4656_v56 }
  0xf3   : > { %v1479_v61 = vadd.f32 %v1447_v38, %v1414_v22  ;;  %v562_v15 = vsel %vm507_vm0, %v4551_v13, %v561_v55  ;;  %v1233_v57 = vmul.f32 %v2546_v6, %v4657_v62  ;;  %v1463_v18 = vmul.f32 %v2551_v10, %v4658_v28 }
  0xf4   : > { %v641_v14 = vadd.f32 %v562_v15, %v367_v59  ;;  %v804_v31 = vsel %vm749_vm1, %v4555_v34, %v803_v24  ;;  %v4553_v16 = vrot.slane %v3842_v20, 2  ;;  %v1109_v39 = vrot.slane %v992_v43, 2  ;;  %v4659_v15 = vld [vmem:[#allocation17_spill] sm:$0xff] }
  0xf5   : > { %v1720_v53 = vadd.f32 %v1617_v40, %v1479_v61  ;;  %v4554_v38 = vrot.slane %v3848_v51, 4  ;;  %v1350_v22 = vrot.slane %v1233_v57, 4  ;;  %v3864_v55 = vmul.f32 %v2553_v11, %v4658_v28 }
  0xf6   : > { %v883_v13 = vadd.f32 %v804_v31, %v641_v14  ;;  %v1110_v59 = vsel %vm507_vm0, %v4553_v16, %v1109_v39  ;;  %v1539_v47 = vmul.f32 %v2553_v11, %v4659_v15  ;;  %v3873_v24 = vmul.f32 %v3348_v33, %v4658_v28 }
  0xf7   : > { %v1961_v40 = vadd.f32 %v1858_v58, %v1720_v53  ;;  %v1351_v43 = vsel %vm749_vm1, %v4554_v38, %v1350_v22  ;;  %v4559_v61 = vrot.slane %v3864_v55, 2  ;;  %v1780_v31 = vmul.f32 %v3348_v33, %v4659_v15  ;;  %v4660_v22 = vld [vmem:[#allocation26_spill] sm:$0xff] }
  0xf8   : > { %v948_v14 = vadd.f32 %v916_v44, %v883_v13  ;;  %v1656_v57 = vrot.slane %v1539_v47, 2  ;;  %v1895_v39 = vrot.slane %v3873_v24, 4  ;;  %v350_v16 = vmul.f32 %v2531_v1, %v3799_v42 }
  0xf9   : > { %2269 = vmatpush.xpose.msk.msra.mxu0 %vm1990_vm2, %v1961_v40  ;;  %2311 = vmatpush.xpose.msk.msra.mxu2 %vm1990_vm2, %v1961_v40  ;;  %v1897_v53 = vrot.slane %v1780_v31, 4  ;;  %v417_v58 = vmul.f32 %v2533_v2, %v3799_v42  ;;  %v659_v28 = vmul.f32 %v2540_v3, %v3799_v42  ;;  %v899_v13 = vmul.f32 %v2542_v4, %v4660_v22 }
  0xfa   : > { %v1189_v47 = vadd.f32 %v1110_v59, %v948_v14  ;;  %v1657_v44 = vsel %vm507_vm0, %v4559_v61, %v1656_v57  ;;  %v966_v15 = vmul.f32 %v2544_v5, %v4660_v22  ;;  %v1207_v40 = vmul.f32 %v2546_v6, %v4660_v22 }
  0xfb   : > { %v1898_v31 = vsel %vm749_vm1, %v1895_v39, %v1897_v53  ;;  %v518_v38 = vrot.slane %v417_v58, 2  ;;  %v760_v34 = vrot.slane %v659_v28, 4  ;;  %v1446_v42 = vmul.f32 %v2551_v10, %v4624_v32  ;;  %v4663_v58 = vld [vmem:[#allocation22_spill] sm:$0xff] }
  0xfc   : > { %v1430_v59 = vadd.f32 %v1351_v43, %v1189_v47  ;;  %v1066_v14 = vrot.slane %v966_v15, 2  ;;  %v1307_v62 = vrot.slane %v1207_v40, 4  ;;  %v1513_v57 = vmul.f32 %v2553_v11, %v4624_v32 }
  0xfd   : > { %v4661_v61 = vrot.slane %v3750_v49, 2  ;;  %v4662_v22 = vrot.slane %v3759_v0, 4  ;;  %v1754_v53 = vmul.f32 %v3348_v33, %v4624_v32  ;;  %v366_v28 = vmul.f32 %v2531_v1, %v4663_v58 }
  0xfe   : > { %v1495_v43 = vadd.f32 %v1463_v18, %v1430_v59  ;;  %v4664_v15 = vrot.slane %v3769_v30, 2  ;;  %v4665_v49 = vrot.slane %v3775_v37, 4  ;;  %v441_v32 = vmul.f32 %v2533_v2, %v4663_v58 }
  0xff   : > { %v520_v56 = vsel %vm507_vm0, %v518_v38, %v4661_v61  ;;  %v762_v60 = vsel %vm749_vm1, %v760_v34, %v4662_v22  ;;  %v1613_v61 = vrot.slane %v1513_v57, 2  ;;  %v1854_v0 = vrot.slane %v1754_v53, 4 }
 0x100   : > { %v624_v47 = vadd.f32 %v520_v56, %v350_v16  ;;  %v1068_v40 = vsel %vm507_vm0, %v1066_v14, %v4664_v15  ;;  %v1309_v38 = vsel %vm749_vm1, %v1307_v62, %v4665_v49  ;;  %v683_v34 = vmul.f32 %v2540_v3, %v4663_v58 }
 0x101   : > { %v1736_v18 = vadd.f32 %v1657_v44, %v1495_v43  ;;  %v915_v30 = vmul.f32 %v2542_v4, %v3476_v52  ;;  %v990_v37 = vmul.f32 %v2544_v5, %v3476_v52  ;;  %v4666_v56 = vrot.slane %v3797_v17, 2  ;;  %v227_v43 = vld [vmem:[%s2538_s11 + $0x20] sm:$0xff] }
 0x102   : > { %v866_v16 = vadd.f32 %v762_v60, %v624_v47  ;;  %v4667_v22 = vrot.slane %v3808_v41, 4  ;;  %v558_v14 = vrot.slane %v441_v32, 2  ;;  %v800_v57 = vrot.slane %v683_v34, 4  ;;  %v228_v47 = vld [vmem:[%s2538_s11 + $0x28] sm:$0xf] }
 0x103   : > { %v1615_v62 = vsel %vm507_vm0, %v1613_v61, %v4666_v56  ;;  %v1977_v53 = vadd.f32 %v1898_v31, %v1736_v18  ;;  %v1106_v44 = vrot.slane %v990_v37, 2  ;;  %v1231_v60 = vmul.f32 %v2546_v6, %v3476_v52 }
 0x104   : > { %v1856_v59 = vsel %vm749_vm1, %v1854_v0, %v4667_v22  ;;  %v931_v15 = vadd.f32 %v899_v13, %v866_v16  ;;  %v4668_v49 = vrot.slane %v3818_v50, 2  ;;  %v4669_v61 = vrot.slane %v3824_v8, 4 }
 0x105   : > { %v1462_v0 = vmul.f32 %v2551_v10, %v3006_v29  ;;  %v1537_v13 = vmul.f32 %v2553_v11, %v3006_v29  ;;  %2287 = vmatpush.xpose.msk.msra.mxu1 %vm1990_vm2, %v1977_v53  ;;  %2327 = vmatpush.xpose.msk.msra.mxu3 %vm1990_vm2, %v1977_v53  ;;  %v4670_v50 = vrot.slane %v3842_v20, 2  ;;  %v1347_v18 = vrot.slane %v1231_v60, 4 }
 0x106   : > { %v560_v17 = vsel %vm507_vm0, %v558_v14, %v4668_v49  ;;  %v802_v41 = vsel %vm749_vm1, %v800_v57, %v4669_v61  ;;  %v1172_v31 = vadd.f32 %v1068_v40, %v931_v15  ;;  %v1778_v16 = vmul.f32 %v3348_v33, %v3006_v29 }
 0x107   : > { %v640_v32 = vadd.f32 %v560_v17, %v366_v28  ;;  %v1108_v34 = vsel %vm507_vm0, %v1106_v44, %v4670_v50  ;;  %v1653_v8 = vrot.slane %v1537_v13, 2  ;;  %v287_v37 = vmax.f32 %v227_v43, 0.0 }
 0x108   : > { %v288_v56 = vmax.f32 %v228_v47, 0.0  ;;  %v1413_v22 = vadd.f32 %v1309_v38, %v1172_v31  ;;  %v4671_v57 = vrot.slane %v3848_v51, 4  ;;  %v898_v28 = vmul.f32 %v2542_v4, %v3515_v54 }
 0x109   : > { %v882_v14 = vadd.f32 %v802_v41, %v640_v32  ;;  %v4672_v20 = vrot.slane %v3864_v55, 2  ;;  %v1894_v53 = vrot.slane %v1778_v16, 4  ;;  %v349_v15 = vmul.f32 %v2531_v1, %v287_v37 }
 0x10a   : > { %v1349_v49 = vsel %vm749_vm1, %v1347_v18, %v4671_v57  ;;  %v3967_v29 = vmul.f32 %v2533_v2, %v287_v37  ;;  %v1478_v44 = vadd.f32 %v1446_v42, %v1413_v22  ;;  %v416_v60 = vmul.f32 %v2533_v2, %v288_v56 }
 0x10b   : > { %v1655_v40 = vsel %vm507_vm0, %v1653_v8, %v4672_v20  ;;  %v947_v38 = vadd.f32 %v915_v30, %v882_v14  ;;  %v3971_v51 = vmul.f32 %v2540_v3, %v287_v37  ;;  %v1896_v43 = vsel %vm749_vm1, %v1894_v53, %v1895_v39 }
 0x10c   : > { %v514_v55 = vrot.slane %v3967_v29, 2  ;;  %v658_v47 = vmul.f32 %v2540_v3, %v288_v56  ;;  %v3980_v17 = vmul.f32 %v2544_v5, %v3515_v54  ;;  %v1719_v61 = vadd.f32 %v1615_v62, %v1478_v44 }
 0x10d   : > { %v1188_v42 = vadd.f32 %v1108_v34, %v947_v38  ;;  %v516_v30 = vrot.slane %v416_v60, 2  ;;  %v756_v41 = vrot.slane %v3971_v51, 4  ;;  %v965_v31 = vmul.f32 %v2544_v5, %v3520_v35 }
 0x10e   : > { %v758_v13 = vrot.slane %v658_v47, 4  ;;  %v1062_v24 = vrot.slane %v3980_v17, 2  ;;  %v3988_v39 = vmul.f32 %v2546_v6, %v3515_v54  ;;  %v1960_v32 = vadd.f32 %v1856_v59, %v1719_v61  ;;  %v4673_v47 = vld [vmem:[#allocation5_spill] sm:$0xff] }
 0x10f   : > { %v1429_v50 = vadd.f32 %v1349_v49, %v1188_v42  ;;  %v517_v62 = vsel %vm507_vm0, %v514_v55, %v516_v30  ;;  %v1206_v34 = vmul.f32 %v2546_v6, %v3520_v35  ;;  %v1064_v16 = vrot.slane %v965_v31, 2  ;;  %v4674_v30 = vld [vmem:[#allocation6_spill] sm:$0xff] }
 0x110   : > { %v623_v18 = vadd.f32 %v517_v62, %v349_v15  ;;  %v759_v8 = vsel %vm749_vm1, %v756_v41, %v758_v13  ;;  %v1303_v37 = vrot.slane %v3988_v39, 4  ;;  %2270 = vmatpush.xpose.msk.msra.mxu0 %vm1990_vm2, %v1960_v32  ;;  %2312 = vmatpush.xpose.msk.msra.mxu2 %vm1990_vm2, %v1960_v32  ;;  %v1445_v56 = vmul.f32 %v2551_v10, %v3053_v48 }
 0x111   : > { %v1494_v54 = vadd.f32 %v1462_v0, %v1429_v50  ;;  %v1305_v59 = vrot.slane %v1206_v34, 4  ;;  %v4005_v35 = vmul.f32 %v2553_v11, %v3053_v48  ;;  %v1065_v14 = vsel %vm507_vm0, %v1062_v24, %v1064_v16 }
 0x112   : > { %v865_v22 = vadd.f32 %v759_v8, %v623_v18  ;;  %v1512_v57 = vmul.f32 %v2553_v11, %v3058_v45  ;;  %v4014_v49 = vmul.f32 %v3348_v33, %v3053_v48  ;;  %v1753_v15 = vmul.f32 %v3348_v33, %v3058_v45 }
 0x113   : > { %v1735_v0 = vadd.f32 %v1655_v40, %v1494_v54  ;;  %v1306_v20 = vsel %vm749_vm1, %v1303_v37, %v1305_v59  ;;  %v1609_v53 = vrot.slane %v4005_v35, 2  ;;  %v365_v61 = vmul.f32 %v2531_v1, %v4673_v47 }
 0x114   : > { %v930_v44 = vadd.f32 %v898_v28, %v865_v22  ;;  %v1611_v38 = vrot.slane %v1512_v57, 2  ;;  %v1850_v60 = vrot.slane %v4014_v49, 4  ;;  %v1852_v48 = vrot.slane %v1753_v15, 4 }
 0x115   : > { %v1976_v42 = vadd.f32 %v1896_v43, %v1735_v0  ;;  %v4027_v40 = vmul.f32 %v2533_v2, %v4673_v47  ;;  %v440_v13 = vmul.f32 %v2533_v2, %v4674_v30  ;;  %v4036_v33 = vmul.f32 %v2540_v3, %v4673_v47 }
 0x116   : > { %v1171_v31 = vadd.f32 %v1065_v14, %v930_v44  ;;  %v1612_v45 = vsel %vm507_vm0, %v1609_v53, %v1611_v38  ;;  %v682_v28 = vmul.f32 %v2540_v3, %v4674_v30  ;;  %v1853_v43 = vsel %vm749_vm1, %v1850_v60, %v1852_v48 }
 0x117   : > { %2288 = vmatpush.xpose.msk.msra.mxu1 %vm1990_vm2, %v1976_v42  ;;  %2328 = vmatpush.xpose.msk.msra.mxu3 %vm1990_vm2, %v1976_v42  ;;  %v554_v32 = vrot.slane %v4027_v40, 2  ;;  %v556_v50 = vrot.slane %v440_v13, 2  ;;  %v914_v62 = vmul.f32 %v2542_v4, %v4638_v36  ;;  %v796_v18 = vrot.slane %v4036_v33, 4 }
 0x118   : > { %v1412_v34 = vadd.f32 %v1306_v20, %v1171_v31  ;;  %v798_v8 = vrot.slane %v682_v28, 4  ;;  %v4051_v16 = vmul.f32 %v2544_v5, %v4638_v36  ;;  %v989_v59 = vmul.f32 %v2544_v5, %v4639_v46  ;;  %v4087_v31 = vld [vmem:[%s4442_s1 + $0x8] ss:$0 sm:$0xff] }
 0x119   : > { %v557_v54 = vsel %vm507_vm0, %v554_v32, %v556_v50  ;;  %v4060_v22 = vmul.f32 %v2546_v6, %v4638_v36  ;;  %v1230_v14 = vmul.f32 %v2546_v6, %v4639_v46  ;;  %v1461_v36 = vmul.f32 %v2551_v10, %v3122_v12  ;;  %v224_v50 = vld [vmem:[%s2538_s11 + $0x8] sm:$0xff] }
 0x11a   : > { %v1477_v57 = vadd.f32 %v1445_v56, %v1412_v34  ;;  %v639_v0 = vadd.f32 %v557_v54, %v365_v61  ;;  %v799_v20 = vsel %vm749_vm1, %v796_v18, %v798_v8  ;;  %v1102_v15 = vrot.slane %v4051_v16, 2  ;;  %v226_v61 = vld [vmem:[%s2538_s11 + $0x18] sm:$0xff] }
 0x11b   : > { %v1104_v44 = vrot.slane %v989_v59, 2  ;;  %v1343_v38 = vrot.slane %v4060_v22, 4  ;;  %v1345_v47 = vrot.slane %v1230_v14, 4  ;;  %v4073_v46 = vmul.f32 %v2553_v11, %v3122_v12 }
 0x11c   : > { %v1718_v42 = vadd.f32 %v1612_v45, %v1477_v57  ;;  %v881_v48 = vadd.f32 %v799_v20, %v639_v0  ;;  %v1536_v56 = vmul.f32 %v2553_v11, %v3129_v27  ;;  %v4091_v45 = vmul.f32 %v4087_v31, %v3122_v12 }
 0x11d   : > { %v1105_v30 = vsel %vm507_vm0, %v1102_v15, %v1104_v44  ;;  %v1346_v13 = vsel %vm749_vm1, %v1343_v38, %v1345_v47  ;;  %v1777_v28 = vmul.f32 %v4087_v31, %v3129_v27  ;;  %v4564_v54 = vrot.slane %v4073_v46, 2 }
 0x11e   : > { %v1959_v34 = vadd.f32 %v1853_v43, %v1718_v42  ;;  %v946_v8 = vadd.f32 %v914_v62, %v881_v48  ;;  %v1651_v59 = vrot.slane %v1536_v56, 2  ;;  %v4563_v14 = vrot.slane %v4091_v45, 4 }
 0x11f   : > { %v1892_v57 = vrot.slane %v1777_v28, 4  ;;  %v286_v0 = vmax.f32 %v226_v61, 0.0  ;;  %v897_v20 = vmul.f32 %v2542_v4, %v3659_v25  ;;  %v963_v43 = vmul.f32 %v2544_v5, %v3659_v25  ;;  %v4675_v28 = vld [vmem:[#allocation23_spill] sm:$0xff] }
 0x120   : > { %2271 = vmatpush.xpose.msk.msra.mxu0 %vm1990_vm2, %v1959_v34  ;;  %2313 = vmatpush.xpose.msk.msra.mxu2 %vm1990_vm2, %v1959_v34  ;;  %v1187_v12 = vadd.f32 %v1105_v30, %v946_v8  ;;  %v1652_v27 = vsel %vm507_vm0, %v4564_v54, %v1651_v59  ;;  %v284_v62 = vmax.f32 %v224_v50, 0.0  ;;  %v1204_v30 = vmul.f32 %v2546_v6, %v3659_v25 }
 0x121   : > { %v1893_v44 = vsel %vm749_vm1, %v4563_v14, %v1892_v57  ;;  %v348_v47 = vmul.f32 %v2531_v1, %v286_v0  ;;  %v414_v42 = vmul.f32 %v2533_v2, %v286_v0  ;;  %v656_v48 = vmul.f32 %v2540_v3, %v286_v0 }
 0x122   : > { %v1428_v56 = vadd.f32 %v1346_v13, %v1187_v12  ;;  %v1061_v61 = vrot.slane %v963_v43, 2  ;;  %v1444_v34 = vmul.f32 %v2551_v10, %v4675_v28  ;;  %v1510_v59 = vmul.f32 %v2553_v11, %v4675_v28  ;;  %v4676_v12 = vld [vmem:[#allocation10_spill] sm:$0xff] }
 0x123   : > { %v513_v8 = vrot.slane %v414_v42, 2  ;;  %v755_v50 = vrot.slane %v656_v48, 4  ;;  %v1751_v57 = vmul.f32 %v4087_v31, %v4675_v28  ;;  %v1302_v0 = vrot.slane %v1204_v30, 4 }
 0x124   : > { %v1493_v14 = vadd.f32 %v1461_v36, %v1428_v56  ;;  %v1063_v13 = vsel %vm507_vm0, %v1061_v61, %v1062_v24  ;;  %v364_v25 = vmul.f32 %v2531_v1, %v4676_v12  ;;  %v1608_v48 = vrot.slane %v1510_v59, 2 }
 0x125   : > { %v515_v43 = vsel %vm507_vm0, %v513_v8, %v514_v55  ;;  %v757_v42 = vsel %vm749_vm1, %v755_v50, %v756_v41  ;;  %v1849_v54 = vrot.slane %v1751_v57, 4  ;;  %v1304_v17 = vsel %vm749_vm1, %v1302_v0, %v1303_v37 }
 0x126   : > { %v1734_v28 = vadd.f32 %v1652_v27, %v1493_v14  ;;  %v622_v36 = vadd.f32 %v515_v43, %v348_v47  ;;  %v438_v24 = vmul.f32 %v2533_v2, %v4676_v12  ;;  %v1610_v29 = vsel %vm507_vm0, %v1608_v48, %v1609_v53 }
 0x127   : > { %v1851_v51 = vsel %vm749_vm1, %v1849_v54, %v1850_v60  ;;  %v680_v55 = vmul.f32 %v2540_v3, %v4676_v12  ;;  %v913_v41 = vmul.f32 %v2542_v4, %v4643_v26  ;;  %v987_v27 = vmul.f32 %v2544_v5, %v4643_v26  ;;  %v225_v60 = vld [vmem:[%s2538_s11 + $0x10] sm:$0xf] }
 0x128   : > { %v1975_v39 = vadd.f32 %v1893_v44, %v1734_v28  ;;  %v864_v14 = vadd.f32 %v757_v42, %v622_v36  ;;  %v553_v37 = vrot.slane %v438_v24, 2  ;;  %v1228_v35 = vmul.f32 %v2546_v6, %v4643_v26 }
 0x129   : > { %v795_v47 = vrot.slane %v680_v55, 4  ;;  %v1460_v49 = vmul.f32 %v2551_v10, %v3214_v21  ;;  %v1534_v53 = vmul.f32 %v2553_v11, %v3214_v21  ;;  %v1101_v56 = vrot.slane %v987_v27, 2 }
 0x12a   : > { %2289 = vmatpush.xpose.msk.msra.mxu1 %vm1990_vm2, %v1975_v39  ;;  %2329 = vmatpush.xpose.msk.msra.mxu3 %vm1990_vm2, %v1975_v39  ;;  %v929_v54 = vadd.f32 %v897_v20, %v864_v14  ;;  %v555_v44 = vsel %vm507_vm0, %v553_v37, %v554_v32  ;;  %v1775_v26 = vmul.f32 %v4087_v31, %v3214_v21  ;;  %v1342_v8 = vrot.slane %v1228_v35, 4 }
 0x12b   : > { %v638_v61 = vadd.f32 %v555_v44, %v364_v25  ;;  %v797_v30 = vsel %vm749_vm1, %v795_v47, %v796_v18  ;;  %v1648_v50 = vrot.slane %v1534_v53, 2  ;;  %v1103_v20 = vsel %vm507_vm0, %v1101_v56, %v1102_v15 }
 0x12c   : > { %v1170_v59 = vadd.f32 %v1063_v13, %v929_v54  ;;  %v1889_v57 = vrot.slane %v1775_v26, 4  ;;  %v285_v40 = vmax.f32 %v225_v60, 0.0  ;;  %v1344_v32 = vsel %vm749_vm1, %v1342_v8, %v1343_v38 }
 0x12d   : > { %v880_v0 = vadd.f32 %v797_v30, %v638_v61  ;;  %v4677_v21 = vrot.slane %v4073_v46, 2  ;;  %v347_v18 = vmul.f32 %v2531_v1, %v284_v62  ;;  %v4678_v13 = vrot.slane %v4091_v45, 4 }
 0x12e   : > { %v1411_v12 = vadd.f32 %v1304_v17, %v1170_v59  ;;  %v4180_v15 = vmul.f32 %v2533_v2, %v284_v62  ;;  %v413_v25 = vmul.f32 %v2533_v2, %v285_v40  ;;  %v4184_v22 = vmul.f32 %v2540_v3, %v284_v62 }
 0x12f   : > { %v1650_v33 = vsel %vm507_vm0, %v1648_v50, %v4677_v21  ;;  %v1891_v16 = vsel %vm749_vm1, %v1889_v57, %v4678_v13  ;;  %v945_v43 = vadd.f32 %v913_v41, %v880_v0  ;;  %v655_v38 = vmul.f32 %v2540_v3, %v285_v40  ;;  %v4679_v50 = vld [vmem:[#allocation12_spill] sm:$0xff]  ;;  %v4680_v21 = vld [vmem:[#allocation13_spill] sm:$0xff] }
 0x130   : > { %v896_v46 = vmul.f32 %v2542_v4, %v3736_v7  ;;  %v1476_v42 = vadd.f32 %v1444_v34, %v1411_v12  ;;  %v509_v48 = vrot.slane %v4180_v15, 2  ;;  %v511_v45 = vrot.slane %v413_v25, 2  ;;  %v4686_v15 = vld [vmem:[#allocation21_spill] sm:$0xff] }
 0x131   : > { %v4192_v28 = vmul.f32 %v2544_v5, %v3736_v7  ;;  %v1186_v36 = vadd.f32 %v1103_v20, %v945_v43  ;;  %v751_v17 = vrot.slane %v4184_v22, 4  ;;  %v753_v24 = vrot.slane %v655_v38, 4 }
 0x132   : > { %v962_v62 = vmul.f32 %v2544_v5, %v3741_v19  ;;  %v1717_v55 = vadd.f32 %v1610_v29, %v1476_v42  ;;  %v512_v41 = vsel %vm507_vm0, %v509_v48, %v511_v45  ;;  %v4203_v39 = vmul.f32 %v2546_v6, %v3736_v7 }
 0x133   : > { %v1057_v34 = vrot.slane %v4192_v28, 2  ;;  %v1427_v14 = vadd.f32 %v1344_v32, %v1186_v36  ;;  %v621_v37 = vadd.f32 %v512_v41, %v347_v18  ;;  %v754_v27 = vsel %vm749_vm1, %v751_v17, %v753_v24  ;;  %v4681_v24 = vld [vmem:[#allocation15_spill] sm:$0xff] }
 0x134   : > { %v1059_v47 = vrot.slane %v962_v62, 2  ;;  %v1958_v35 = vadd.f32 %v1851_v51, %v1717_v55  ;;  %v1203_v29 = vmul.f32 %v2546_v6, %v3741_v19  ;;  %v1298_v53 = vrot.slane %v4203_v39, 4  ;;  %v2139_v39 = vld [vmem:[%s4444_s3] sm:$0xff] }
 0x135   : > { %v1443_v60 = vmul.f32 %v2551_v10, %v3275_v9  ;;  %v1492_v54 = vadd.f32 %v1460_v49, %v1427_v14  ;;  %v863_v44 = vadd.f32 %v754_v27, %v621_v37  ;;  %v4218_v56 = vmul.f32 %v2553_v11, %v3275_v9 }
 0x136   : > { %v1060_v7 = vsel %vm507_vm0, %v1057_v34, %v1059_v47  ;;  %2272 = vmatpush.xpose.msk.msra.mxu0 %vm1990_vm2, %v1958_v35  ;;  %2314 = vmatpush.xpose.msk.msra.mxu2 %vm1990_vm2, %v1958_v35  ;;  %v1300_v19 = vrot.slane %v1203_v29, 4  ;;  %v1509_v51 = vmul.f32 %v2553_v11, %v3285_v23  ;;  %v4226_v49 = vmul.f32 %v4087_v31, %v3275_v9 }
 0x137   : > { %v1750_v26 = vmul.f32 %v4087_v31, %v3285_v23  ;;  %v1733_v61 = vadd.f32 %v1650_v33, %v1492_v54  ;;  %v928_v30 = vadd.f32 %v896_v46, %v863_v44  ;;  %v1604_v8 = vrot.slane %v4218_v56, 2 }
 0x138   : > { %v363_v59 = vmul.f32 %v2531_v1, %v4679_v50  ;;  %v1301_v20 = vsel %vm749_vm1, %v1298_v53, %v1300_v19  ;;  %v1606_v57 = vrot.slane %v1509_v51, 2  ;;  %v1845_v40 = vrot.slane %v4226_v49, 4  ;;  %v4682_v51 = vld [vmem:[#allocation24_spill] sm:$0xff]  ;;  %v2156_v49 = vld [vmem:[%s4445_s4 + $0x8] sm:$0xff] }
 0x139   : > { %v1847_v0 = vrot.slane %v1750_v26, 4  ;;  %v1974_v9 = vadd.f32 %v1891_v16, %v1733_v61  ;;  %v1169_v32 = vadd.f32 %v1060_v7, %v928_v30  ;;  %v4239_v23 = vmul.f32 %v2533_v2, %v4679_v50  ;;  %v223_v7 = vld [vmem:[%s2538_s11] sm:$0xff]  ;;  %s2401_s11 = scalar_lea.hbm %s4446_s5, 64 }
 0x13a   : > { %v437_v33 = vmul.f32 %v2533_v2, %v4680_v21  ;;  %v1607_v18 = vsel %vm507_vm0, %v1604_v8, %v1606_v57  ;;  %v4251_v13 = vmul.f32 %v2540_v3, %v4679_v50  ;;  %v679_v16 = vmul.f32 %v2540_v3, %v4680_v21  ;;  %v4683_v26 = vld [vmem:[#allocation25_spill] sm:$0xff]  ;;  %p2403_p1 = scmp.lt.s32.totalorder %s2401_s11, %s2397_s8 }
 0x13b   : > { %v1848_v12 = vsel %vm749_vm1, %v1845_v40, %v1847_v0  ;;  %2290 = vmatpush.xpose.msk.msra.mxu1 %vm1990_vm2, %v1974_v9  ;;  %2330 = vmatpush.xpose.msk.msra.mxu3 %vm1990_vm2, %v1974_v9  ;;  %v1410_v25 = vadd.f32 %v1301_v20, %v1169_v32  ;;  %v549_v43 = vrot.slane %v4239_v23, 2  ;;  %v912_v46 = vmul.f32 %v2542_v4, %v4654_v63 }
 0x13c   : > { %v551_v38 = vrot.slane %v437_v33, 2  ;;  %v791_v42 = vrot.slane %v4251_v13, 4  ;;  %v793_v45 = vrot.slane %v679_v16, 4  ;;  %v4263_v36 = vmul.f32 %v2544_v5, %v4654_v63  ;;  %p2404_p2 = por %p2403_p1, %p2402_p0 }
 0x13d   : > { %v986_v62 = vmul.f32 %v2544_v5, %v4681_v24  ;;  %v1475_v55 = vadd.f32 %v1443_v60, %v1410_v25  ;;  %v4272_v14 = vmul.f32 %v2546_v6, %v4654_v63  ;;  %v1227_v37 = vmul.f32 %v2546_v6, %v4681_v24 }
 0x13e   : > { %v552_v41 = vsel %vm507_vm0, %v549_v43, %v551_v38  ;;  %v794_v47 = vsel %vm749_vm1, %v791_v42, %v793_v45  ;;  %v1097_v35 = vrot.slane %v4263_v36, 2  ;;  %v4284_v63 = vmul.f32 %v2553_v11, %v4682_v51  ;;  %p2405_p3 = pnand %p2404_p2, %p2400_p13 }
 0x13f   : > { %v637_v27 = vadd.f32 %v552_v41, %v363_v59  ;;  %v1099_v29 = vrot.slane %v986_v62, 2  ;;  %v1716_v60 = vadd.f32 %v1607_v18, %v1475_v55  ;;  %v1338_v54 = vrot.slane %v4272_v14, 4  ;;  %v4684_v18 = vld [vmem:[#allocation18_spill] sm:$0xff] }
 0x140   : > { %v1340_v44 = vrot.slane %v1227_v37, 4  ;;  %v1533_v61 = vmul.f32 %v2553_v11, %v4683_v26  ;;  %v4293_v59 = vmul.f32 %v4087_v31, %v4682_v51  ;;  %v1774_v20 = vmul.f32 %v4087_v31, %v4683_v26  ;;  %v1989_v14 = vld [vmem:[%s4443_s2 + $0x8] sm:$0xff] }
 0x141   : > { %v879_v19 = vadd.f32 %v794_v47, %v637_v27  ;;  %v1957_v30 = vadd.f32 %v1848_v12, %v1716_v60  ;;  %v1100_v50 = vsel %vm507_vm0, %v1097_v35, %v1099_v29  ;;  %v1459_v0 = vmul.f32 %v2551_v10, %v4682_v51 }
 0x142   : > { %v283_v9 = vmax.f32 %v223_v7, 0.0  ;;  %v1341_v32 = vsel %vm749_vm1, %v1338_v54, %v1340_v44  ;;  %v1644_v21 = vrot.slane %v4284_v63, 2  ;;  %v1646_v33 = vrot.slane %v1533_v61, 2  ;;  %v4685_v61 = vld [vmem:[#allocation26_spill] sm:$0xff] }
 0x143   : > { %v944_v57 = vadd.f32 %v912_v46, %v879_v19  ;;  %2273 = vmatpush.xpose.msk.msra.mxu0 %vm1990_vm2, %v1957_v30  ;;  %2315 = vmatpush.xpose.msk.msra.mxu2 %vm1990_vm2, %v1957_v30  ;;  %v960_v12 = vmul.f32 %v2544_v5, %v4684_v18  ;;  %v1885_v25 = vrot.slane %v4293_v59, 4  ;;  %v1887_v38 = vrot.slane %v1774_v20, 4 }
 0x144   : > { %v411_v46 = vmul.f32 %v2533_v2, %v283_v9  ;;  %v346_v45 = vmul.f32 %v2531_v1, %v283_v9  ;;  %v653_v24 = vmul.f32 %v2540_v3, %v283_v9  ;;  %v1201_v37 = vmul.f32 %v2546_v6, %v4684_v18 }
 0x145   : > { %v1185_v16 = vadd.f32 %v1100_v50, %v944_v57  ;;  %v1056_v62 = vrot.slane %v960_v12, 2  ;;  %v1647_v27 = vsel %vm507_vm0, %v1644_v21, %v1646_v33  ;;  %v1888_v60 = vsel %vm749_vm1, %v1885_v25, %v1887_v38 }
 0x146   : > { %v508_v41 = vrot.slane %v411_v46, 2  ;;  %v750_v47 = vrot.slane %v653_v24, 4  ;;  %v895_v7 = vmul.f32 %v2542_v4, %v4684_v18  ;;  %v1507_v30 = vmul.f32 %v2553_v11, %v4685_v61 }
 0x147   : > { %v1426_v55 = vadd.f32 %v1341_v32, %v1185_v16  ;;  %v1058_v26 = vsel %vm507_vm0, %v1056_v62, %v1057_v34  ;;  %v1297_v20 = vrot.slane %v1201_v37, 4  ;;  %v677_v57 = vmul.f32 %v2540_v3, %v4686_v15 }
 0x148   : > { %v510_v44 = vsel %vm507_vm0, %v508_v41, %v509_v48  ;;  %v752_v51 = vsel %vm749_vm1, %v750_v47, %v751_v17  ;;  %v435_v48 = vmul.f32 %v2533_v2, %v4686_v15  ;;  %v1748_v22 = vmul.f32 %v4087_v31, %v4685_v61 }
 0x149   : > { %v1491_v29 = vadd.f32 %v1459_v0, %v1426_v55  ;;  %v620_v19 = vadd.f32 %v510_v44, %v346_v45  ;;  %v362_v28 = vmul.f32 %v2531_v1, %v4686_v15  ;;  %v984_v17 = vmul.f32 %v2544_v5, %v4663_v58 }
 0x14a   : > { %v548_v9 = vrot.slane %v435_v48, 2  ;;  %v790_v32 = vrot.slane %v677_v57, 4  ;;  %v1225_v33 = vmul.f32 %v2546_v6, %v4663_v58  ;;  %v1603_v18 = vrot.slane %v1507_v30, 2 }
 0x14b   : > { %v1732_v50 = vadd.f32 %v1647_v27, %v1491_v29  ;;  %v862_v0 = vadd.f32 %v752_v51, %v620_v19  ;;  %v1299_v3 = vsel %vm749_vm1, %v1297_v20, %v1298_v53  ;;  %v1096_v12 = vrot.slane %v984_v17, 2  ;;  %v2155_v53 = vld [vmem:[%s4445_s4] sm:$0xff]  ;;  %v2140_v29 = vld [vmem:[%s4444_s3 + $0x8] sm:$0xff] }
 0x14c   : > { %v550_v1 = vsel %vm507_vm0, %v548_v9, %v549_v43  ;;  %v792_v5 = vsel %vm749_vm1, %v790_v32, %v791_v42  ;;  %v1442_v16 = vmul.f32 %v2551_v10, %v4685_v61  ;;  %v911_v46 = vmul.f32 %v2542_v4, %v4663_v58 }
 0x14d   : > { %v1973_v34 = vadd.f32 %v1888_v60, %v1732_v50  ;;  %v927_v2 = vadd.f32 %v895_v7, %v862_v0  ;;  %v636_v38 = vadd.f32 %v550_v1, %v362_v28  ;;  %v1844_v23 = vrot.slane %v1748_v22, 4 }
 0x14e   : > { %v1337_v13 = vrot.slane %v1225_v33, 4  ;;  %v1531_v43 = vmul.f32 %v2553_v11, %v3476_v52  ;;  %v2445_v24 = vmov 0   ;;  %v1605_v4 = vsel %vm507_vm0, %v1603_v18, %v1604_v8 }
 0x14f   : > { %2291 = vmatpush.xpose.msk.msra.mxu1 %vm1990_vm2, %v1973_v34  ;;  %2331 = vmatpush.xpose.msk.msra.mxu3 %vm1990_vm2, %v1973_v34  ;;  %v1168_v6 = vadd.f32 %v1058_v26, %v927_v2  ;;  %v878_v45 = vadd.f32 %v792_v5, %v636_v38  ;;  %v1098_v58 = vsel %vm507_vm0, %v1096_v12, %v1097_v35 }
 0x150   : > { %2376 = vset.pattern.permute.xlu0 %v2445_v24  ;;  %2377 = vset.pattern.permute.xlu1 %v2445_v24  ;;  %v1772_v62 = vmul.f32 %v4087_v31, %v3476_v52  ;;  %v1846_v41 = vsel %vm749_vm1, %v1844_v23, %v1845_v40  ;;  %v1339_v56 = vsel %vm749_vm1, %v1337_v13, %v1338_v54  ;;  %v1643_v8 = vrot.slane %v1531_v43, 2 }
 0x151   : > { %v1409_v42 = vadd.f32 %v1299_v3, %v1168_v6  ;;  %2143 = vperm.xlu0 %2376, %v2139_v39   ;;  %2159 = vperm.xlu1 %2377, %v2155_v53   ;;  %v943_v11 = vadd.f32 %v911_v46, %v878_v45  ;;  %v1458_v35 = vmul.f32 %v2551_v10, %v3476_v52  ;;  %v1988_v52 = vld [vmem:[%s4443_s2] sm:$0xff] }
 0x152   : > { %v1884_v27 = vrot.slane %v1772_v62, 4  ;;  %v1645_v40 = vsel %vm507_vm0, %v1643_v8, %v1644_v21 }
 0x153   : > { %v1474_v55 = vadd.f32 %v1442_v16, %v1409_v42  ;;  %v1184_v36 = vadd.f32 %v1098_v58, %v943_v11 }
 0x154   : > { %v1886_v54 = vsel %vm749_vm1, %v1884_v27, %v1885_v25 }
 0x155   : > { %v1715_v37 = vadd.f32 %v1605_v4, %v1474_v55  ;;  %v1425_v47 = vadd.f32 %v1339_v56, %v1184_v36 }
 0x157   : > { %v1956_v31 = vadd.f32 %v1846_v41, %v1715_v37  ;;  %v1490_v10 = vadd.f32 %v1458_v35, %v1425_v47 }
 0x159   : > { %2274 = vmatpush.xpose.msk.msra.mxu0 %vm1990_vm2, %v1956_v31  ;;  %2316 = vmatpush.xpose.msk.msra.mxu2 %vm1990_vm2, %v1956_v31  ;;  %v1731_v63 = vadd.f32 %v1645_v40, %v1490_v10 }
 0x15a   : > { %2148 = vperm.xlu0 %2376, %v2140_v29   ;;  %2164 = vperm.xlu1 %2377, %v2156_v49  }
 0x15b   : > { %v1972_v21 = vadd.f32 %v1886_v54, %v1731_v63 }
 0x15c   : > { %2275 = vmatmul.msk.f32.vlgmr.msra.gmra.mxu0 %vm1990_vm2, %v1988_v52  ;;  %2276 = vmatmul.msk.f32.vlgmr.msra.gmra.mxu2 %vm1990_vm2, %v1989_v14 }
 0x15d   : > { %2292 = vmatpush.xpose.msk.msra.mxu1 %vm1990_vm2, %v1972_v21  ;;  %2332 = vmatpush.xpose.msk.msra.mxu3 %vm1990_vm2, %v1972_v21 }
 0x160   : > { %2293 = vmatmul.msk.f32.vlgmr.msra.gmra.mxu1 %vm1990_vm2, %v1988_v52  ;;  %2294 = vmatmul.msk.f32.vlgmr.msra.gmra.mxu3 %vm1990_vm2, %v1989_v14 }
 0x1c3   : > { %v2144_v59 = vpop.permute.xlu0 %2143  ;;  %v2160_v25 = vpop.permute.xlu1 %2159 }
 0x1cc   : > { %v2149_v19 = vpop.permute.xlu0 %2148  ;;  %v2165_v50 = vpop.permute.xlu1 %2164 }
 0x1d9   : > { %v2110_v60 = vpop.f32.mrf.mxu0 }
 0x1da   : > { %v2151_v44 = vmul.f32 %v2144_v59, %v2110_v60 }
 0x1dc   : > { %v2167_v7 = vadd.f32 %v2160_v25, %v2151_v44 }
 0x1dd   : > { %v2133_v51 = vpop.f32.mrf.mxu1 }
 0x1de   : > { %2171 = vst [vmem:[%s217_s16] sm:$0xff] %v2167_v7  ;;  %v2152_v61 = vmul.f32 %v2144_v59, %v2133_v51 }
 0x1df   : > { %v2113_v26 = vpop.f32.mrf.mxu2 }
 0x1e0   : > { %v2153_v30 = vmul.f32 %v2149_v19, %v2113_v26  ;;  %v2168_v20 = vadd.f32 %v2160_v25, %v2152_v61 }
 0x1e2   : > { %v2169_v15 = vadd.f32 %v2165_v50, %v2153_v30  ;;  %2172 = vst [vmem:[%s217_s16 + $0x8] sm:$0xff] %v2168_v20 }
 0x1e3   : > { %v2136_v48 = vpop.f32.mrf.mxu3 }
 0x1e4   : > { %2173 = vst [vmem:[%s217_s16 + $0x10] sm:$0xff] %v2169_v15  ;;  %v2154_v57 = vmul.f32 %v2149_v19, %v2136_v48 }
 0x1e6   : > { %v2170_v0 = vadd.f32 %v2165_v50, %v2154_v57 }
 0x1e8   : > { %2174 = vst [vmem:[%s217_s16 + $0x18] sm:$0xff] %v2170_v0 }
 0x1e9   : > { %2408 = shalt.err (!%p2405_p3)
}
 0x1ea   : > { %s2446_s14 = smov 256   ;;  %s2447_s15 = smov 16  }
 0x1eb   : > { %2334 = dma.vmem_to_hbm [thread:$0]  (%p2516_p5), %s2189_s30, 512, %s2191_s6, %s2176_s22, %s2446_s14, %s2446_s14, %s2447_s15  }
 0x1ec PF: > { %p2340_p4 = scmp.ge.s32.totalorder %s2443_s21, 2  ;;  %s2205_s16 = sand.u32 1, %s2431_s18  }
 0x1ed   : > { %s2206_s17 = scalar_lea.sflag [#allocation3], %s2205_s16 }
 0x1ee   : > { %p2337_p7 = pnand %p2340_p4, %p2520_p6 }
 0x1f0   : > { %p2338_p8 = pneg %p2337_p7 }
 0x1f2   : > { %2426 = dma.done.wait (%p2338_p8), %s2206_s17, 512  }
 0x1f3   : > { %2428 = vsyncadd (%p2338_p8), %s2206_s17, 4294966784  ;;  %p15_p9 = scmp.ge.s32.totalorder %s2503_s24, 4   ;;  %s4687_s18 = smov %s2435_s19 }
 0x1f4   : > { %s4688_s19 = smov %s2439_s20  ;;  %s4689_s20 = smov %s2514_s27 }
 0x1f5   : > { %s4690_s21 = smov %s2503_s24  ;;  %17 = sbr.rel (!%p15_p9) target bundleno = 3 (0x3), region = 75 }
 0x1fa   :  { %2212 = vsyncpa [#allocation3], 1 }
 0x1fb   :  { %2214 = vsyncpa [#allocation3 + $0x1], 1 }

</bundles_post_ra>
